<compile_context>
chip_gen: v6e
topology: v6e:2x2x1
jax: 0.10.0
libtpu: 0.0.40
codegen_flags: <defaults>
</compile_context>

<pallas_src>
import jax
import jax.numpy as jnp
from jax.experimental import pallas as pl
from jax.experimental.pallas import tpu as pltpu

# ---------------- problem sizes (small, consistent with the module) ----------
B = 2                 # batch (demo)
L = 16                # sequence length
CIN = 16              # input_size (feature dim of the (B, L, F) input)
K = 5                 # conv kernel_size
PAD = (K - 1) // 2    # 'same' padding = 2
C = 128               # num_channels = [128, 128, 128]
H = 64                # fc hidden
NOUT = 3              # fc output classes
BN_EPS = 1e-5

# ---------------- fused batch-slab layout (per batch tile of 2 sequences) ----
SEQS_PER_TILE = 2
ACC_STRIDE = 24                 # per-sequence row stride in acc/xcol (8-aligned)
GAP = ACC_STRIDE - L            # 8 zero rows between sequences
DATA_OFF = 8                    # slab row where seq-0 data starts (8-aligned)
TAP_OFF = DATA_OFF - PAD        # = 6: slab row of tap-0 for acc row 0
ROWS_T = ACC_STRIDE * (SEQS_PER_TILE - 1) + L      # 40 acc / xcol rows per tile
SLAB_R = DATA_OFF + ACC_STRIDE * SEQS_PER_TILE     # 56 slab rows
FEAT_R = 8                      # padded pooled-feature rows (>= SEQS_PER_TILE)

assert ROWS_T % 8 == 0 and SLAB_R % 8 == 0 and DATA_OFF % 8 == 0
assert TAP_OFF + (K - 1) + ROWS_T <= SLAB_R        # tap reads stay in the slab


# ---------------- in-kernel math helpers -------------------------------------
def _erf(x):
    # Abramowitz & Stegun 7.1.26 polynomial; the divide goes to the EUP slot.
    a1, a2, a3, a4, a5 = (0.254829592, -0.284496736, 1.421413741,
                          -1.453152027, 1.061405429)
    p = 0.3275911
    z = jnp.abs(x)
    t = pl.reciprocal(1.0 + p * z, approx=True)
    poly = ((((a5 * t + a4) * t + a3) * t + a2) * t + a1) * t
    y = 1.0 - poly * jnp.exp(-z * z)
    return jnp.where(x >= 0.0, y, -y)


def _gelu(x):
    # erf-based GELU, matching torch.nn.GELU() default (f32 math throughout).
    return 0.5 * x * (1.0 + _erf(x * 0.7071067811865476))


# ---------------- the fused kernel --------------------------------------------
def tcn_kernel(xcol_ref, w1_ref, w2_ref, w3_ref, fw1_ref, fw2_ref, cst_ref,
               out_ref, slab_ref, feat_ref):
    # Zero only the pad blocks (all 8-row aligned); data rows are fully
    # rewritten by each layer's store before they are read again.
    z8 = jnp.zeros((GAP, C), jnp.float32)
    slab_ref[0:DATA_OFF, :] = z8                       # leading pad rows 0..7
    for s in range(SEQS_PER_TILE):
        r = DATA_OFF + s * ACC_STRIDE + L              # rows 24..31, 48..55
        slab_ref[r:r + GAP, :] = z8

    # Packed constants: one (16,128) DMA instead of 9 tiny ones.
    cst = cst_ref[...]
    b1, s1, t1 = cst[0:1], cst[1:2], cst[2:3]
    b2, s2, t2 = cst[3:4], cst[4:5], cst[5:6]
    b3, fb1, fb2 = cst[6:7], cst[7:8], cst[8:9]

    def store_rows(h):
        # Write each sequence's 16 valid rows into the slab (8-aligned stores).
        for s in range(SEQS_PER_TILE):
            a = s * ACC_STRIDE
            d = DATA_OFF + a
            slab_ref[d:d + L, :] = h[a:a + L]

    # ---- Conv1 (Cin=16 -> 128, k=5, 'same'): one lane-dense 40x128x128 matmul.
    # xcol is the wrapper-built im2col, lane-padded to 128; Conv -> GELU ->
    # BN(eval); Dropout(0.3) is identity in eval mode.
    c1 = jnp.dot(xcol_ref[...], w1_ref[...], preferred_element_type=jnp.float32)
    store_rows(_gelu(c1 + b1) * s1 + t1)

    # ---- Conv2 / Conv3 (128 -> 128): direct per-tap accumulation (no im2col).
    def tap_conv(w_ref):
        acc = jnp.zeros((ROWS_T, C), jnp.float32)
        for k in range(K):
            lhs = slab_ref[TAP_OFF + k:TAP_OFF + k + ROWS_T, :].astype(jnp.bfloat16)
            acc = acc + jnp.dot(lhs, w_ref[k * C:(k + 1) * C, :],
                                preferred_element_type=jnp.float32)
        return acc

    c2 = tap_conv(w2_ref)
    store_rows(_gelu(c2 + b2) * s2 + t2)               # GELU -> BN -> Dropout(id)

    c3 = tap_conv(w3_ref)

    # ---- AdaptiveMaxPool1d(1): conv3 feeds the pool directly, so the
    # per-channel bias commutes with the max and is added afterwards.
    feat_ref[...] = jnp.zeros((FEAT_R, C), jnp.float32)
    for s in range(SEQS_PER_TILE):
        a = s * ACC_STRIDE
        feat_ref[s:s + 1, :] = jnp.max(c3[a:a + L, :], axis=0, keepdims=True) + b3

    # ---- FC head: Linear(128,64) + GELU + Dropout(id) + Linear(64,3).
    # Both weights are lane-padded to 128x128 (zero columns / rows), so every
    # operand and the final store are unmasked 128-lane accesses.
    z = jnp.dot(feat_ref[...].astype(jnp.bfloat16), fw1_ref[...],
                preferred_element_type=jnp.float32) + fb1
    out_ref[...] = jnp.dot(_gelu(z).astype(jnp.bfloat16), fw2_ref[...],
                           preferred_element_type=jnp.float32) + fb2


# ---------------- wrapper ------------------------------------------------------
def _build_xcol(x):
    """x: (B, L, CIN) f32 -> layer-1 im2col in the fused-slab row layout.

    Returns (T*ROWS_T, 128) bf16 where, within tile t, rows [s*24, s*24+16)
    hold the K*CIN (zero-lane-padded to 128) windows of sequence 2t+s and the
    8-row gaps are zero. Pure layout (pad + window gather), no arithmetic.
    """
    bx = x.shape[0]
    t = pl.cdiv(bx, SEQS_PER_TILE)
    bpad = t * SEQS_PER_TILE
    x = jnp.pad(x, ((0, bpad - bx), (0, 0), (0, 0)))
    xp = jnp.pad(x, ((0, 0), (PAD, PAD), (0, 0)))                    # (Bp, L+4, CIN)
    win = jnp.stack([xp[:, k:k + L, :] for k in range(K)], axis=2)   # (Bp, L, K, CIN)
    win = win.reshape(bpad, L, K * CIN)
    win = jnp.pad(win, ((0, 0), (0, 0), (0, C - K * CIN)))           # 80 -> 128 lanes
    win = win.reshape(t, SEQS_PER_TILE, L, C)
    gap = jnp.zeros((t, GAP, C), win.dtype)
    parts = []
    for s in range(SEQS_PER_TILE):
        parts.append(win[:, s])
        if s + 1 < SEQS_PER_TILE:
            parts.append(gap)
    xcol = jnp.concatenate(parts, axis=1)                            # (T, 40, 128)
    return xcol.reshape(t * ROWS_T, C).astype(jnp.bfloat16), t


@jax.jit
def tcn_forward(x, params):
    """x: (B, L, CIN) float32 — same as the PyTorch module's forward input."""
    xcol, num_tiles = _build_xcol(x)

    def const_spec(shape):
        # Constant index_map -> tile 0 for every grid step: the weight stays
        # VMEM-resident across the (parallel) batch-tile axis.
        return pl.BlockSpec(shape, lambda i, _n=len(shape): (0,) * _n)

    out_full = pl.pallas_call(
        tcn_kernel,
        out_shape=jax.ShapeDtypeStruct((num_tiles * FEAT_R, C), jnp.float32),
        grid=(num_tiles,),
        in_specs=[
            pl.BlockSpec((ROWS_T, C), lambda i: (i, 0)),   # per-tile layer-1 im2col
            const_spec((C, C)),          # w1  (K*CIN padded to 128, x Cout)
            const_spec((K * C, C)),      # w2  (per-tap rows k*128..(k+1)*128)
            const_spec((K * C, C)),      # w3
            const_spec((C, C)),          # fw1 (128 x 64->128)
            const_spec((C, C)),          # fw2 (64->128 x 3->128)
            const_spec((16, C)),         # packed biases / folded BN scale+shift
        ],
        out_specs=pl.BlockSpec((FEAT_R, C), lambda i: (i, 0)),
        scratch_shapes=[
            pltpu.VMEM((SLAB_R, C), jnp.float32),   # fused padded activation slab
            pltpu.VMEM((FEAT_R, C), jnp.float32),   # pooled features (row-padded)
        ],
        compiler_params=pltpu.CompilerParams(
            dimension_semantics=("parallel",)),
    )(xcol, params["w1"], params["w2"], params["w3"],
      params["fw1"], params["fw2"], params["cst"])

    out = out_full.reshape(num_tiles, FEAT_R, C)[:, :SEQS_PER_TILE, :NOUT]
    return out.reshape(num_tiles * SEQS_PER_TILE, NOUT)[:x.shape[0]]


# ---------------- deterministic parameter construction -------------------------
def make_params(key):
    ks = jax.random.split(key, 18)

    def n(i, shape, scale=0.1):
        return jax.random.normal(ks[i], shape, jnp.float32) * scale

    def u(i, shape):
        return jax.random.uniform(ks[i], shape, jnp.float32, 0.5, 1.5)

    def conv_to_taps(w_pt):            # PyTorch (Cout, Cin, K) -> (K*Cin, Cout)
        cout, cin, k = w_pt.shape
        return jnp.transpose(w_pt, (2, 1, 0)).reshape(k * cin, cout)

    def bn_fold(gamma, beta, mean, var):
        s = gamma / jnp.sqrt(var + BN_EPS)
        return s, beta - mean * s

    # Conv1 + BN1 (running stats)
    w1_pt, b1 = n(0, (C, CIN, K)), n(1, (C,))
    s1, t1 = bn_fold(u(2, (C,)), n(3, (C,)), n(4, (C,)), u(5, (C,)))
    # Conv2 + BN2
    w2_pt, b2 = n(6, (C, C, K)), n(7, (C,))
    s2, t2 = bn_fold(u(8, (C,)), n(9, (C,)), n(10, (C,)), u(11, (C,)))
    # Conv3
    w3_pt, b3 = n(12, (C, C, K)), n(13, (C,))
    # FC head (PyTorch Linear weight is (out, in))
    fw1_pt, fb1 = n(14, (H, C)), n(15, (H,))
    fw2_pt, fb2 = n(16, (NOUT, H)), n(17, (NOUT,))

    w1 = jnp.pad(conv_to_taps(w1_pt), ((0, C - K * CIN), (0, 0)))   # 80 -> 128 rows
    params = {
        "w1": w1.astype(jnp.bfloat16),
        "w2": conv_to_taps(w2_pt).astype(jnp.bfloat16),
        "w3": conv_to_taps(w3_pt).astype(jnp.bfloat16),
        "fw1": jnp.pad(fw1_pt.T, ((0, 0), (0, C - H))).astype(jnp.bfloat16),
        "fw2": jnp.pad(fw2_pt.T, ((0, C - H), (0, C - NOUT))).astype(jnp.bfloat16),
    }

    def row(v):
        return jnp.pad(v.reshape(1, -1), ((0, 0), (0, C - v.shape[0])))

    params["cst"] = jnp.concatenate(
        [row(b1), row(s1), row(t1),
         row(b2), row(s2), row(t2),
         row(b3), row(fb1), row(fb2),
         jnp.zeros((16 - 9, C), jnp.float32)], axis=0)               # (16, 128)
    return params


if __name__ == "__main__":
    key = jax.random.PRNGKey(0)
    kx, kp = jax.random.split(key)
    x = jax.random.normal(kx, (B, L, CIN), jnp.float32)    # (batch, seq, features)
    params = make_params(kp)

    out = tcn_forward(x, params)
    jax.block_until_ready(out)
    assert out.shape == (B, NOUT) and out.dtype == jnp.float32
    print("KERNEL_OK")
</pallas_src>

<mosaic_0001>
module attributes {stable_mosaic.version = 11 : i64} {
  func.func @tcn_kernel(%arg0: i32, %arg1: memref<40x128xbf16, #tpu.memory_space<vmem>>, %arg2: memref<128x128xbf16, #tpu.memory_space<vmem>>, %arg3: memref<640x128xbf16, #tpu.memory_space<vmem>>, %arg4: memref<640x128xbf16, #tpu.memory_space<vmem>>, %arg5: memref<128x128xbf16, #tpu.memory_space<vmem>>, %arg6: memref<128x128xbf16, #tpu.memory_space<vmem>>, %arg7: memref<16x128xf32, #tpu.memory_space<vmem>>, %arg8: memref<8x128xf32, #tpu.memory_space<vmem>>, %arg9: memref<56x128xf32, #tpu.memory_space<vmem>>, %arg10: memref<8x128xf32, #tpu.memory_space<vmem>>) attributes {dimension_semantics = [#tpu.dimension_semantics<parallel>], iteration_bounds = array<i64: 1>, scalar_prefetch = 0 : i64, scratch_operands = 2 : i64, tpu.core_type = #tpu.core_type<tc>, window_params = [{transform_indices = @transform_0, window_bounds = array<i64: 40, 128>}, {pipeline_mode = #tpu.pipeline_mode<synchronous>, transform_indices = @transform_1, window_bounds = array<i64: 128, 128>}, {pipeline_mode = #tpu.pipeline_mode<synchronous>, transform_indices = @transform_2, window_bounds = array<i64: 640, 128>}, {pipeline_mode = #tpu.pipeline_mode<synchronous>, transform_indices = @transform_3, window_bounds = array<i64: 640, 128>}, {pipeline_mode = #tpu.pipeline_mode<synchronous>, transform_indices = @transform_4, window_bounds = array<i64: 128, 128>}, {pipeline_mode = #tpu.pipeline_mode<synchronous>, transform_indices = @transform_5, window_bounds = array<i64: 128, 128>}, {pipeline_mode = #tpu.pipeline_mode<synchronous>, transform_indices = @transform_6, window_bounds = array<i64: 16, 128>}, {transform_indices = @transform_7, window_bounds = array<i64: 8, 128>}]} {
    %cst = arith.constant 0.000000e+00 : f32
    %0 = vector.broadcast %cst : f32 to vector<8x128xf32>
    %c0 = arith.constant 0 : index
    %c0_0 = arith.constant 0 : index
    %1 = vector.load %arg9[%c0, %c0_0] : memref<56x128xf32, #tpu.memory_space<vmem>>, vector<8x128xf32>
    tpu.vector_store %arg9[%c0, %c0_0], %0 {strides = array<i32>} : memref<56x128xf32, #tpu.memory_space<vmem>>, vector<8x128xf32>,
    %c24 = arith.constant 24 : index
    %c0_1 = arith.constant 0 : index
    %2 = vector.load %arg9[%c24, %c0_1] : memref<56x128xf32, #tpu.memory_space<vmem>>, vector<8x128xf32>
    tpu.vector_store %arg9[%c24, %c0_1], %0 {strides = array<i32>} : memref<56x128xf32, #tpu.memory_space<vmem>>, vector<8x128xf32>,
    %c48 = arith.constant 48 : index
    %c0_2 = arith.constant 0 : index
    %3 = vector.load %arg9[%c48, %c0_2] : memref<56x128xf32, #tpu.memory_space<vmem>>, vector<8x128xf32>
    tpu.vector_store %arg9[%c48, %c0_2], %0 {strides = array<i32>} : memref<56x128xf32, #tpu.memory_space<vmem>>, vector<8x128xf32>,
    %c0_3 = arith.constant 0 : index
    %c0_4 = arith.constant 0 : index
    %4 = vector.load %arg7[%c0_3, %c0_4] : memref<16x128xf32, #tpu.memory_space<vmem>>, vector<16x128xf32>
    %5 = vector.extract_strided_slice %4 {offsets = [0, 0], sizes = [1, 128], strides = [1, 1]} : vector<16x128xf32> to vector<1x128xf32>
    %6 = vector.extract_strided_slice %4 {offsets = [1, 0], sizes = [1, 128], strides = [1, 1]} : vector<16x128xf32> to vector<1x128xf32>
    %7 = vector.extract_strided_slice %4 {offsets = [2, 0], sizes = [1, 128], strides = [1, 1]} : vector<16x128xf32> to vector<1x128xf32>
    %8 = vector.extract_strided_slice %4 {offsets = [3, 0], sizes = [1, 128], strides = [1, 1]} : vector<16x128xf32> to vector<1x128xf32>
    %9 = vector.extract_strided_slice %4 {offsets = [4, 0], sizes = [1, 128], strides = [1, 1]} : vector<16x128xf32> to vector<1x128xf32>
    %10 = vector.extract_strided_slice %4 {offsets = [5, 0], sizes = [1, 128], strides = [1, 1]} : vector<16x128xf32> to vector<1x128xf32>
    %11 = vector.extract_strided_slice %4 {offsets = [6, 0], sizes = [1, 128], strides = [1, 1]} : vector<16x128xf32> to vector<1x128xf32>
    %12 = vector.extract_strided_slice %4 {offsets = [7, 0], sizes = [1, 128], strides = [1, 1]} : vector<16x128xf32> to vector<1x128xf32>
    %13 = vector.extract_strided_slice %4 {offsets = [8, 0], sizes = [1, 128], strides = [1, 1]} : vector<16x128xf32> to vector<1x128xf32>
    %c0_5 = arith.constant 0 : index
    %c0_6 = arith.constant 0 : index
    %14 = vector.load %arg1[%c0_5, %c0_6] : memref<40x128xbf16, #tpu.memory_space<vmem>>, vector<40x128xbf16>
    %c0_7 = arith.constant 0 : index
    %c0_8 = arith.constant 0 : index
    %15 = vector.load %arg2[%c0_7, %c0_8] : memref<128x128xbf16, #tpu.memory_space<vmem>>, vector<128x128xbf16>
    %cst_9 = arith.constant dense<0.000000e+00> : vector<40x128xf32>
    %16 = tpu.matmul %14, %15, %cst_9 {dimension_numbers = #tpu.dot_dimension_numbers<[1], [0], [0], [1], [0, 0, 1, 1], [], []>} : vector<40x128xbf16>, vector<128x128xbf16>, vector<40x128xf32> -> vector<40x128xf32>
    %17 = vector.broadcast %5 : vector<1x128xf32> to vector<40x128xf32>
    %18 = arith.addf %16, %17 : vector<40x128xf32>
    %cst_10 = arith.constant 5.000000e-01 : f32
    %19 = vector.broadcast %cst_10 : f32 to vector<40x128xf32>
    %20 = arith.mulf %19, %18 : vector<40x128xf32>
    %cst_11 = arith.constant 0.707106769 : f32
    %21 = vector.broadcast %cst_11 : f32 to vector<40x128xf32>
    %22 = arith.mulf %18, %21 : vector<40x128xf32>
    %23 = math.absf %22 : vector<40x128xf32>
    %cst_12 = arith.constant 0.327591091 : f32
    %24 = vector.broadcast %cst_12 : f32 to vector<40x128xf32>
    %25 = arith.mulf %24, %23 : vector<40x128xf32>
    %cst_13 = arith.constant 1.000000e+00 : f32
    %26 = vector.broadcast %cst_13 : f32 to vector<40x128xf32>
    %27 = arith.addf %26, %25 : vector<40x128xf32>
    %28 = tpu.reciprocal %27 {approx = true} : vector<40x128xf32> -> vector<40x128xf32>
    %cst_14 = arith.constant 1.06140542 : f32
    %29 = vector.broadcast %cst_14 : f32 to vector<40x128xf32>
    %30 = arith.mulf %29, %28 : vector<40x128xf32>
    %cst_15 = arith.constant -1.45315206 : f32
    %31 = vector.broadcast %cst_15 : f32 to vector<40x128xf32>
    %32 = arith.addf %30, %31 : vector<40x128xf32>
    %33 = arith.mulf %32, %28 : vector<40x128xf32>
    %cst_16 = arith.constant 1.42141378 : f32
    %34 = vector.broadcast %cst_16 : f32 to vector<40x128xf32>
    %35 = arith.addf %33, %34 : vector<40x128xf32>
    %36 = arith.mulf %35, %28 : vector<40x128xf32>
    %cst_17 = arith.constant -0.284496725 : f32
    %37 = vector.broadcast %cst_17 : f32 to vector<40x128xf32>
    %38 = arith.addf %36, %37 : vector<40x128xf32>
    %39 = arith.mulf %38, %28 : vector<40x128xf32>
    %cst_18 = arith.constant 0.254829586 : f32
    %40 = vector.broadcast %cst_18 : f32 to vector<40x128xf32>
    %41 = arith.addf %39, %40 : vector<40x128xf32>
    %42 = arith.mulf %41, %28 : vector<40x128xf32>
    %cst_19 = arith.constant 0.000000e+00 : f32
    %43 = vector.broadcast %cst_19 : f32 to vector<40x128xf32>
    %44 = arith.subf %43, %23 : vector<40x128xf32>
    %45 = arith.mulf %44, %23 : vector<40x128xf32>
    %46 = math.exp %45 : vector<40x128xf32>
    %47 = arith.mulf %42, %46 : vector<40x128xf32>
    %cst_20 = arith.constant 1.000000e+00 : f32
    %48 = vector.broadcast %cst_20 : f32 to vector<40x128xf32>
    %49 = arith.subf %48, %47 : vector<40x128xf32>
    %cst_21 = arith.constant 0.000000e+00 : f32
    %50 = vector.broadcast %cst_21 : f32 to vector<40x128xf32>
    %51 = arith.cmpf oge, %22, %50 : vector<40x128xf32>
    %cst_22 = arith.constant 0.000000e+00 : f32
    %52 = vector.broadcast %cst_22 : f32 to vector<40x128xf32>
    %53 = arith.subf %52, %49 : vector<40x128xf32>
    %54 = arith.select %51, %49, %53 : vector<40x128xi1>, vector<40x128xf32>
    %cst_23 = arith.constant 1.000000e+00 : f32
    %55 = vector.broadcast %cst_23 : f32 to vector<40x128xf32>
    %56 = arith.addf %55, %54 : vector<40x128xf32>
    %57 = arith.mulf %20, %56 : vector<40x128xf32>
    %58 = vector.broadcast %6 : vector<1x128xf32> to vector<40x128xf32>
    %59 = arith.mulf %57, %58 : vector<40x128xf32>
    %60 = vector.broadcast %7 : vector<1x128xf32> to vector<40x128xf32>
    %61 = arith.addf %59, %60 : vector<40x128xf32>
    %62 = vector.extract_strided_slice %61 {offsets = [0, 0], sizes = [16, 128], strides = [1, 1]} : vector<40x128xf32> to vector<16x128xf32>
    %c8 = arith.constant 8 : index
    %c0_24 = arith.constant 0 : index
    %63 = vector.load %arg9[%c8, %c0_24] : memref<56x128xf32, #tpu.memory_space<vmem>>, vector<16x128xf32>
    tpu.vector_store %arg9[%c8, %c0_24], %62 {strides = array<i32>} : memref<56x128xf32, #tpu.memory_space<vmem>>, vector<16x128xf32>,
    %64 = vector.extract_strided_slice %61 {offsets = [24, 0], sizes = [16, 128], strides = [1, 1]} : vector<40x128xf32> to vector<16x128xf32>
    %c32 = arith.constant 32 : index
    %c0_25 = arith.constant 0 : index
    %65 = vector.load %arg9[%c32, %c0_25] : memref<56x128xf32, #tpu.memory_space<vmem>>, vector<16x128xf32>
    tpu.vector_store %arg9[%c32, %c0_25], %64 {strides = array<i32>} : memref<56x128xf32, #tpu.memory_space<vmem>>, vector<16x128xf32>,
    %cst_26 = arith.constant 0.000000e+00 : f32
    %66 = vector.broadcast %cst_26 : f32 to vector<40x128xf32>
    %c6 = arith.constant 6 : index
    %c0_27 = arith.constant 0 : index
    %67 = vector.load %arg9[%c6, %c0_27] : memref<56x128xf32, #tpu.memory_space<vmem>>, vector<40x128xf32>
    %68 = arith.truncf %67 : vector<40x128xf32> to vector<40x128xbf16>
    %c0_28 = arith.constant 0 : index
    %c0_29 = arith.constant 0 : index
    %69 = vector.load %arg3[%c0_28, %c0_29] : memref<640x128xbf16, #tpu.memory_space<vmem>>, vector<128x128xbf16>
    %cst_30 = arith.constant dense<0.000000e+00> : vector<40x128xf32>
    %70 = tpu.matmul %68, %69, %cst_30 {dimension_numbers = #tpu.dot_dimension_numbers<[1], [0], [0], [1], [0, 0, 1, 1], [], []>} : vector<40x128xbf16>, vector<128x128xbf16>, vector<40x128xf32> -> vector<40x128xf32>
    %71 = arith.addf %66, %70 : vector<40x128xf32>
    %c7 = arith.constant 7 : index
    %c0_31 = arith.constant 0 : index
    %72 = vector.load %arg9[%c7, %c0_31] : memref<56x128xf32, #tpu.memory_space<vmem>>, vector<40x128xf32>
    %73 = arith.truncf %72 : vector<40x128xf32> to vector<40x128xbf16>
    %c128 = arith.constant 128 : index
    %c0_32 = arith.constant 0 : index
    %74 = vector.load %arg3[%c128, %c0_32] : memref<640x128xbf16, #tpu.memory_space<vmem>>, vector<128x128xbf16>
    %cst_33 = arith.constant dense<0.000000e+00> : vector<40x128xf32>
    %75 = tpu.matmul %73, %74, %cst_33 {dimension_numbers = #tpu.dot_dimension_numbers<[1], [0], [0], [1], [0, 0, 1, 1], [], []>} : vector<40x128xbf16>, vector<128x128xbf16>, vector<40x128xf32> -> vector<40x128xf32>
    %76 = arith.addf %71, %75 : vector<40x128xf32>
    %c8_34 = arith.constant 8 : index
    %c0_35 = arith.constant 0 : index
    %77 = vector.load %arg9[%c8_34, %c0_35] : memref<56x128xf32, #tpu.memory_space<vmem>>, vector<40x128xf32>
    %78 = arith.truncf %77 : vector<40x128xf32> to vector<40x128xbf16>
    %c256 = arith.constant 256 : index
    %c0_36 = arith.constant 0 : index
    %79 = vector.load %arg3[%c256, %c0_36] : memref<640x128xbf16, #tpu.memory_space<vmem>>, vector<128x128xbf16>
    %cst_37 = arith.constant dense<0.000000e+00> : vector<40x128xf32>
    %80 = tpu.matmul %78, %79, %cst_37 {dimension_numbers = #tpu.dot_dimension_numbers<[1], [0], [0], [1], [0, 0, 1, 1], [], []>} : vector<40x128xbf16>, vector<128x128xbf16>, vector<40x128xf32> -> vector<40x128xf32>
    %81 = arith.addf %76, %80 : vector<40x128xf32>
    %c9 = arith.constant 9 : index
    %c0_38 = arith.constant 0 : index
    %82 = vector.load %arg9[%c9, %c0_38] : memref<56x128xf32, #tpu.memory_space<vmem>>, vector<40x128xf32>
    %83 = arith.truncf %82 : vector<40x128xf32> to vector<40x128xbf16>
    %c384 = arith.constant 384 : index
    %c0_39 = arith.constant 0 : index
    %84 = vector.load %arg3[%c384, %c0_39] : memref<640x128xbf16, #tpu.memory_space<vmem>>, vector<128x128xbf16>
    %cst_40 = arith.constant dense<0.000000e+00> : vector<40x128xf32>
    %85 = tpu.matmul %83, %84, %cst_40 {dimension_numbers = #tpu.dot_dimension_numbers<[1], [0], [0], [1], [0, 0, 1, 1], [], []>} : vector<40x128xbf16>, vector<128x128xbf16>, vector<40x128xf32> -> vector<40x128xf32>
    %86 = arith.addf %81, %85 : vector<40x128xf32>
    %c10 = arith.constant 10 : index
    %c0_41 = arith.constant 0 : index
    %87 = vector.load %arg9[%c10, %c0_41] : memref<56x128xf32, #tpu.memory_space<vmem>>, vector<40x128xf32>
    %88 = arith.truncf %87 : vector<40x128xf32> to vector<40x128xbf16>
    %c512 = arith.constant 512 : index
    %c0_42 = arith.constant 0 : index
    %89 = vector.load %arg3[%c512, %c0_42] : memref<640x128xbf16, #tpu.memory_space<vmem>>, vector<128x128xbf16>
    %cst_43 = arith.constant dense<0.000000e+00> : vector<40x128xf32>
    %90 = tpu.matmul %88, %89, %cst_43 {dimension_numbers = #tpu.dot_dimension_numbers<[1], [0], [0], [1], [0, 0, 1, 1], [], []>} : vector<40x128xbf16>, vector<128x128xbf16>, vector<40x128xf32> -> vector<40x128xf32>
    %91 = arith.addf %86, %90 : vector<40x128xf32>
    %92 = vector.broadcast %8 : vector<1x128xf32> to vector<40x128xf32>
    %93 = arith.addf %91, %92 : vector<40x128xf32>
    %cst_44 = arith.constant 5.000000e-01 : f32
    %94 = vector.broadcast %cst_44 : f32 to vector<40x128xf32>
    %95 = arith.mulf %94, %93 : vector<40x128xf32>
    %cst_45 = arith.constant 0.707106769 : f32
    %96 = vector.broadcast %cst_45 : f32 to vector<40x128xf32>
    %97 = arith.mulf %93, %96 : vector<40x128xf32>
    %98 = math.absf %97 : vector<40x128xf32>
    %cst_46 = arith.constant 0.327591091 : f32
    %99 = vector.broadcast %cst_46 : f32 to vector<40x128xf32>
    %100 = arith.mulf %99, %98 : vector<40x128xf32>
    %cst_47 = arith.constant 1.000000e+00 : f32
    %101 = vector.broadcast %cst_47 : f32 to vector<40x128xf32>
    %102 = arith.addf %101, %100 : vector<40x128xf32>
    %103 = tpu.reciprocal %102 {approx = true} : vector<40x128xf32> -> vector<40x128xf32>
    %cst_48 = arith.constant 1.06140542 : f32
    %104 = vector.broadcast %cst_48 : f32 to vector<40x128xf32>
    %105 = arith.mulf %104, %103 : vector<40x128xf32>
    %cst_49 = arith.constant -1.45315206 : f32
    %106 = vector.broadcast %cst_49 : f32 to vector<40x128xf32>
    %107 = arith.addf %105, %106 : vector<40x128xf32>
    %108 = arith.mulf %107, %103 : vector<40x128xf32>
    %cst_50 = arith.constant 1.42141378 : f32
    %109 = vector.broadcast %cst_50 : f32 to vector<40x128xf32>
    %110 = arith.addf %108, %109 : vector<40x128xf32>
    %111 = arith.mulf %110, %103 : vector<40x128xf32>
    %cst_51 = arith.constant -0.284496725 : f32
    %112 = vector.broadcast %cst_51 : f32 to vector<40x128xf32>
    %113 = arith.addf %111, %112 : vector<40x128xf32>
    %114 = arith.mulf %113, %103 : vector<40x128xf32>
    %cst_52 = arith.constant 0.254829586 : f32
    %115 = vector.broadcast %cst_52 : f32 to vector<40x128xf32>
    %116 = arith.addf %114, %115 : vector<40x128xf32>
    %117 = arith.mulf %116, %103 : vector<40x128xf32>
    %cst_53 = arith.constant 0.000000e+00 : f32
    %118 = vector.broadcast %cst_53 : f32 to vector<40x128xf32>
    %119 = arith.subf %118, %98 : vector<40x128xf32>
    %120 = arith.mulf %119, %98 : vector<40x128xf32>
    %121 = math.exp %120 : vector<40x128xf32>
    %122 = arith.mulf %117, %121 : vector<40x128xf32>
    %cst_54 = arith.constant 1.000000e+00 : f32
    %123 = vector.broadcast %cst_54 : f32 to vector<40x128xf32>
    %124 = arith.subf %123, %122 : vector<40x128xf32>
    %cst_55 = arith.constant 0.000000e+00 : f32
    %125 = vector.broadcast %cst_55 : f32 to vector<40x128xf32>
    %126 = arith.cmpf oge, %97, %125 : vector<40x128xf32>
    %cst_56 = arith.constant 0.000000e+00 : f32
    %127 = vector.broadcast %cst_56 : f32 to vector<40x128xf32>
    %128 = arith.subf %127, %124 : vector<40x128xf32>
    %129 = arith.select %126, %124, %128 : vector<40x128xi1>, vector<40x128xf32>
    %cst_57 = arith.constant 1.000000e+00 : f32
    %130 = vector.broadcast %cst_57 : f32 to vector<40x128xf32>
    %131 = arith.addf %130, %129 : vector<40x128xf32>
    %132 = arith.mulf %95, %131 : vector<40x128xf32>
    %133 = vector.broadcast %9 : vector<1x128xf32> to vector<40x128xf32>
    %134 = arith.mulf %132, %133 : vector<40x128xf32>
    %135 = vector.broadcast %10 : vector<1x128xf32> to vector<40x128xf32>
    %136 = arith.addf %134, %135 : vector<40x128xf32>
    %137 = vector.extract_strided_slice %136 {offsets = [0, 0], sizes = [16, 128], strides = [1, 1]} : vector<40x128xf32> to vector<16x128xf32>
    %c8_58 = arith.constant 8 : index
    %c0_59 = arith.constant 0 : index
    %138 = vector.load %arg9[%c8_58, %c0_59] : memref<56x128xf32, #tpu.memory_space<vmem>>, vector<16x128xf32>
    tpu.vector_store %arg9[%c8_58, %c0_59], %137 {strides = array<i32>} : memref<56x128xf32, #tpu.memory_space<vmem>>, vector<16x128xf32>,
    %139 = vector.extract_strided_slice %136 {offsets = [24, 0], sizes = [16, 128], strides = [1, 1]} : vector<40x128xf32> to vector<16x128xf32>
    %c32_60 = arith.constant 32 : index
    %c0_61 = arith.constant 0 : index
    %140 = vector.load %arg9[%c32_60, %c0_61] : memref<56x128xf32, #tpu.memory_space<vmem>>, vector<16x128xf32>
    tpu.vector_store %arg9[%c32_60, %c0_61], %139 {strides = array<i32>} : memref<56x128xf32, #tpu.memory_space<vmem>>, vector<16x128xf32>,
    %cst_62 = arith.constant 0.000000e+00 : f32
    %141 = vector.broadcast %cst_62 : f32 to vector<40x128xf32>
    %c6_63 = arith.constant 6 : index
    %c0_64 = arith.constant 0 : index
    %142 = vector.load %arg9[%c6_63, %c0_64] : memref<56x128xf32, #tpu.memory_space<vmem>>, vector<40x128xf32>
    %143 = arith.truncf %142 : vector<40x128xf32> to vector<40x128xbf16>
    %c0_65 = arith.constant 0 : index
    %c0_66 = arith.constant 0 : index
    %144 = vector.load %arg4[%c0_65, %c0_66] : memref<640x128xbf16, #tpu.memory_space<vmem>>, vector<128x128xbf16>
    %cst_67 = arith.constant dense<0.000000e+00> : vector<40x128xf32>
    %145 = tpu.matmul %143, %144, %cst_67 {dimension_numbers = #tpu.dot_dimension_numbers<[1], [0], [0], [1], [0, 0, 1, 1], [], []>} : vector<40x128xbf16>, vector<128x128xbf16>, vector<40x128xf32> -> vector<40x128xf32>
    %146 = arith.addf %141, %145 : vector<40x128xf32>
    %c7_68 = arith.constant 7 : index
    %c0_69 = arith.constant 0 : index
    %147 = vector.load %arg9[%c7_68, %c0_69] : memref<56x128xf32, #tpu.memory_space<vmem>>, vector<40x128xf32>
    %148 = arith.truncf %147 : vector<40x128xf32> to vector<40x128xbf16>
    %c128_70 = arith.constant 128 : index
    %c0_71 = arith.constant 0 : index
    %149 = vector.load %arg4[%c128_70, %c0_71] : memref<640x128xbf16, #tpu.memory_space<vmem>>, vector<128x128xbf16>
    %cst_72 = arith.constant dense<0.000000e+00> : vector<40x128xf32>
    %150 = tpu.matmul %148, %149, %cst_72 {dimension_numbers = #tpu.dot_dimension_numbers<[1], [0], [0], [1], [0, 0, 1, 1], [], []>} : vector<40x128xbf16>, vector<128x128xbf16>, vector<40x128xf32> -> vector<40x128xf32>
    %151 = arith.addf %146, %150 : vector<40x128xf32>
    %c8_73 = arith.constant 8 : index
    %c0_74 = arith.constant 0 : index
    %152 = vector.load %arg9[%c8_73, %c0_74] : memref<56x128xf32, #tpu.memory_space<vmem>>, vector<40x128xf32>
    %153 = arith.truncf %152 : vector<40x128xf32> to vector<40x128xbf16>
    %c256_75 = arith.constant 256 : index
    %c0_76 = arith.constant 0 : index
    %154 = vector.load %arg4[%c256_75, %c0_76] : memref<640x128xbf16, #tpu.memory_space<vmem>>, vector<128x128xbf16>
    %cst_77 = arith.constant dense<0.000000e+00> : vector<40x128xf32>
    %155 = tpu.matmul %153, %154, %cst_77 {dimension_numbers = #tpu.dot_dimension_numbers<[1], [0], [0], [1], [0, 0, 1, 1], [], []>} : vector<40x128xbf16>, vector<128x128xbf16>, vector<40x128xf32> -> vector<40x128xf32>
    %156 = arith.addf %151, %155 : vector<40x128xf32>
    %c9_78 = arith.constant 9 : index
    %c0_79 = arith.constant 0 : index
    %157 = vector.load %arg9[%c9_78, %c0_79] : memref<56x128xf32, #tpu.memory_space<vmem>>, vector<40x128xf32>
    %158 = arith.truncf %157 : vector<40x128xf32> to vector<40x128xbf16>
    %c384_80 = arith.constant 384 : index
    %c0_81 = arith.constant 0 : index
    %159 = vector.load %arg4[%c384_80, %c0_81] : memref<640x128xbf16, #tpu.memory_space<vmem>>, vector<128x128xbf16>
    %cst_82 = arith.constant dense<0.000000e+00> : vector<40x128xf32>
    %160 = tpu.matmul %158, %159, %cst_82 {dimension_numbers = #tpu.dot_dimension_numbers<[1], [0], [0], [1], [0, 0, 1, 1], [], []>} : vector<40x128xbf16>, vector<128x128xbf16>, vector<40x128xf32> -> vector<40x128xf32>
    %161 = arith.addf %156, %160 : vector<40x128xf32>
    %c10_83 = arith.constant 10 : index
    %c0_84 = arith.constant 0 : index
    %162 = vector.load %arg9[%c10_83, %c0_84] : memref<56x128xf32, #tpu.memory_space<vmem>>, vector<40x128xf32>
    %163 = arith.truncf %162 : vector<40x128xf32> to vector<40x128xbf16>
    %c512_85 = arith.constant 512 : index
    %c0_86 = arith.constant 0 : index
    %164 = vector.load %arg4[%c512_85, %c0_86] : memref<640x128xbf16, #tpu.memory_space<vmem>>, vector<128x128xbf16>
    %cst_87 = arith.constant dense<0.000000e+00> : vector<40x128xf32>
    %165 = tpu.matmul %163, %164, %cst_87 {dimension_numbers = #tpu.dot_dimension_numbers<[1], [0], [0], [1], [0, 0, 1, 1], [], []>} : vector<40x128xbf16>, vector<128x128xbf16>, vector<40x128xf32> -> vector<40x128xf32>
    %166 = arith.addf %161, %165 : vector<40x128xf32>
    %cst_88 = arith.constant 0.000000e+00 : f32
    %167 = vector.broadcast %cst_88 : f32 to vector<8x128xf32>
    %c0_89 = arith.constant 0 : index
    %c0_90 = arith.constant 0 : index
    %168 = vector.load %arg10[%c0_89, %c0_90] : memref<8x128xf32, #tpu.memory_space<vmem>>, vector<8x128xf32>
    tpu.vector_store %arg10[%c0_89, %c0_90], %167 {strides = array<i32>} : memref<8x128xf32, #tpu.memory_space<vmem>>, vector<8x128xf32>,
    %169 = vector.extract_strided_slice %166 {offsets = [0, 0], sizes = [16, 128], strides = [1, 1]} : vector<40x128xf32> to vector<16x128xf32>
    %cst_91 = arith.constant dense<0xFF800000> : vector<128xf32>
    %170 = vector.multi_reduction <maximumf>, %169, %cst_91 [0] : vector<16x128xf32> to vector<128xf32>
    %171 = vector.shape_cast %170 : vector<128xf32> to vector<1x128xf32>
    %172 = arith.addf %171, %11 : vector<1x128xf32>
    %c0_92 = arith.constant 0 : index
    %c0_93 = arith.constant 0 : index
    %173 = vector.load %arg10[%c0_92, %c0_93] : memref<8x128xf32, #tpu.memory_space<vmem>>, vector<1x128xf32>
    tpu.vector_store %arg10[%c0_92, %c0_93], %172 {strides = array<i32>} : memref<8x128xf32, #tpu.memory_space<vmem>>, vector<1x128xf32>,
    %174 = vector.extract_strided_slice %166 {offsets = [24, 0], sizes = [16, 128], strides = [1, 1]} : vector<40x128xf32> to vector<16x128xf32>
    %cst_94 = arith.constant dense<0xFF800000> : vector<128xf32>
    %175 = vector.multi_reduction <maximumf>, %174, %cst_94 [0] : vector<16x128xf32> to vector<128xf32>
    %176 = vector.shape_cast %175 : vector<128xf32> to vector<1x128xf32>
    %177 = arith.addf %176, %11 : vector<1x128xf32>
    %c1 = arith.constant 1 : index
    %c0_95 = arith.constant 0 : index
    %178 = vector.load %arg10[%c1, %c0_95] : memref<8x128xf32, #tpu.memory_space<vmem>>, vector<1x128xf32>
    tpu.vector_store %arg10[%c1, %c0_95], %177 {strides = array<i32>} : memref<8x128xf32, #tpu.memory_space<vmem>>, vector<1x128xf32>,
    %c0_96 = arith.constant 0 : index
    %c0_97 = arith.constant 0 : index
    %179 = vector.load %arg10[%c0_96, %c0_97] : memref<8x128xf32, #tpu.memory_space<vmem>>, vector<8x128xf32>
    %180 = arith.truncf %179 : vector<8x128xf32> to vector<8x128xbf16>
    %c0_98 = arith.constant 0 : index
    %c0_99 = arith.constant 0 : index
    %181 = vector.load %arg5[%c0_98, %c0_99] : memref<128x128xbf16, #tpu.memory_space<vmem>>, vector<128x128xbf16>
    %cst_100 = arith.constant dense<0.000000e+00> : vector<8x128xf32>
    %182 = tpu.matmul %180, %181, %cst_100 {dimension_numbers = #tpu.dot_dimension_numbers<[1], [0], [0], [1], [0, 0, 1, 1], [], []>} : vector<8x128xbf16>, vector<128x128xbf16>, vector<8x128xf32> -> vector<8x128xf32>
    %183 = vector.broadcast %12 : vector<1x128xf32> to vector<8x128xf32>
    %184 = arith.addf %182, %183 : vector<8x128xf32>
    %cst_101 = arith.constant 5.000000e-01 : f32
    %185 = vector.broadcast %cst_101 : f32 to vector<8x128xf32>
    %186 = arith.mulf %185, %184 : vector<8x128xf32>
    %cst_102 = arith.constant 0.707106769 : f32
    %187 = vector.broadcast %cst_102 : f32 to vector<8x128xf32>
    %188 = arith.mulf %184, %187 : vector<8x128xf32>
    %189 = math.absf %188 : vector<8x128xf32>
    %cst_103 = arith.constant 0.327591091 : f32
    %190 = vector.broadcast %cst_103 : f32 to vector<8x128xf32>
    %191 = arith.mulf %190, %189 : vector<8x128xf32>
    %cst_104 = arith.constant 1.000000e+00 : f32
    %192 = vector.broadcast %cst_104 : f32 to vector<8x128xf32>
    %193 = arith.addf %192, %191 : vector<8x128xf32>
    %194 = tpu.reciprocal %193 {approx = true} : vector<8x128xf32> -> vector<8x128xf32>
    %cst_105 = arith.constant 1.06140542 : f32
    %195 = vector.broadcast %cst_105 : f32 to vector<8x128xf32>
    %196 = arith.mulf %195, %194 : vector<8x128xf32>
    %cst_106 = arith.constant -1.45315206 : f32
    %197 = vector.broadcast %cst_106 : f32 to vector<8x128xf32>
    %198 = arith.addf %196, %197 : vector<8x128xf32>
    %199 = arith.mulf %198, %194 : vector<8x128xf32>
    %cst_107 = arith.constant 1.42141378 : f32
    %200 = vector.broadcast %cst_107 : f32 to vector<8x128xf32>
    %201 = arith.addf %199, %200 : vector<8x128xf32>
    %202 = arith.mulf %201, %194 : vector<8x128xf32>
    %cst_108 = arith.constant -0.284496725 : f32
    %203 = vector.broadcast %cst_108 : f32 to vector<8x128xf32>
    %204 = arith.addf %202, %203 : vector<8x128xf32>
    %205 = arith.mulf %204, %194 : vector<8x128xf32>
    %cst_109 = arith.constant 0.254829586 : f32
    %206 = vector.broadcast %cst_109 : f32 to vector<8x128xf32>
    %207 = arith.addf %205, %206 : vector<8x128xf32>
    %208 = arith.mulf %207, %194 : vector<8x128xf32>
    %cst_110 = arith.constant 0.000000e+00 : f32
    %209 = vector.broadcast %cst_110 : f32 to vector<8x128xf32>
    %210 = arith.subf %209, %189 : vector<8x128xf32>
    %211 = arith.mulf %210, %189 : vector<8x128xf32>
    %212 = math.exp %211 : vector<8x128xf32>
    %213 = arith.mulf %208, %212 : vector<8x128xf32>
    %cst_111 = arith.constant 1.000000e+00 : f32
    %214 = vector.broadcast %cst_111 : f32 to vector<8x128xf32>
    %215 = arith.subf %214, %213 : vector<8x128xf32>
    %cst_112 = arith.constant 0.000000e+00 : f32
    %216 = vector.broadcast %cst_112 : f32 to vector<8x128xf32>
    %217 = arith.cmpf oge, %188, %216 : vector<8x128xf32>
    %cst_113 = arith.constant 0.000000e+00 : f32
    %218 = vector.broadcast %cst_113 : f32 to vector<8x128xf32>
    %219 = arith.subf %218, %215 : vector<8x128xf32>
    %220 = arith.select %217, %215, %219 : vector<8x128xi1>, vector<8x128xf32>
    %cst_114 = arith.constant 1.000000e+00 : f32
    %221 = vector.broadcast %cst_114 : f32 to vector<8x128xf32>
    %222 = arith.addf %221, %220 : vector<8x128xf32>
    %223 = arith.mulf %186, %222 : vector<8x128xf32>
    %224 = arith.truncf %223 : vector<8x128xf32> to vector<8x128xbf16>
    %c0_115 = arith.constant 0 : index
    %c0_116 = arith.constant 0 : index
    %225 = vector.load %arg6[%c0_115, %c0_116] : memref<128x128xbf16, #tpu.memory_space<vmem>>, vector<128x128xbf16>
    %cst_117 = arith.constant dense<0.000000e+00> : vector<8x128xf32>
    %226 = tpu.matmul %224, %225, %cst_117 {dimension_numbers = #tpu.dot_dimension_numbers<[1], [0], [0], [1], [0, 0, 1, 1], [], []>} : vector<8x128xbf16>, vector<128x128xbf16>, vector<8x128xf32> -> vector<8x128xf32>
    %227 = vector.broadcast %13 : vector<1x128xf32> to vector<8x128xf32>
    %228 = arith.addf %226, %227 : vector<8x128xf32>
    %c0_118 = arith.constant 0 : index
    %c0_119 = arith.constant 0 : index
    %229 = vector.load %arg8[%c0_118, %c0_119] : memref<8x128xf32, #tpu.memory_space<vmem>>, vector<8x128xf32>
    tpu.vector_store %arg8[%c0_118, %c0_119], %228 {strides = array<i32>} : memref<8x128xf32, #tpu.memory_space<vmem>>, vector<8x128xf32>,
    return
  }
  func.func @transform_0(%arg0: i32) -> (i32, i32) {
    %c0_i32 = arith.constant 0 : i32
    %c0_i32_0 = arith.constant 0 : i32
    return %arg0, %c0_i32 : i32, i32
  }
  func.func @transform_1(%arg0: i32) -> (i32, i32) {
    %c0_i32 = arith.constant 0 : i32
    %c0_i32_0 = arith.constant 0 : i32
    %c0_i32_1 = arith.constant 0 : i32
    return %c0_i32, %c0_i32_0 : i32, i32
  }
  func.func @transform_2(%arg0: i32) -> (i32, i32) {
    %c0_i32 = arith.constant 0 : i32
    %c0_i32_0 = arith.constant 0 : i32
    %c0_i32_1 = arith.constant 0 : i32
    return %c0_i32, %c0_i32_0 : i32, i32
  }
  func.func @transform_3(%arg0: i32) -> (i32, i32) {
    %c0_i32 = arith.constant 0 : i32
    %c0_i32_0 = arith.constant 0 : i32
    %c0_i32_1 = arith.constant 0 : i32
    return %c0_i32, %c0_i32_0 : i32, i32
  }
  func.func @transform_4(%arg0: i32) -> (i32, i32) {
    %c0_i32 = arith.constant 0 : i32
    %c0_i32_0 = arith.constant 0 : i32
    %c0_i32_1 = arith.constant 0 : i32
    return %c0_i32, %c0_i32_0 : i32, i32
  }
  func.func @transform_5(%arg0: i32) -> (i32, i32) {
    %c0_i32 = arith.constant 0 : i32
    %c0_i32_0 = arith.constant 0 : i32
    %c0_i32_1 = arith.constant 0 : i32
    return %c0_i32, %c0_i32_0 : i32, i32
  }
  func.func @transform_6(%arg0: i32) -> (i32, i32) {
    %c0_i32 = arith.constant 0 : i32
    %c0_i32_0 = arith.constant 0 : i32
    %c0_i32_1 = arith.constant 0 : i32
    return %c0_i32, %c0_i32_0 : i32, i32
  }
  func.func @transform_7(%arg0: i32) -> (i32, i32) {
    %c0_i32 = arith.constant 0 : i32
    %c0_i32_0 = arith.constant 0 : i32
    return %arg0, %c0_i32 : i32, i32
  }
}

</mosaic_0001>

<bundles_post_ra>
// kernel: tcn_forward.1
= control target key start
LH: loop header
LB: loop body
LE: loop exit
PB: predicated region body
PF: predicated region fallthrough
CT: control target
= control target key end

     0   :  { %12 = vsyncpa [#allocation5], 0  ;;  %s3460_s0 = inlined_call_operand.vmem [shape: bf16[40,128], index: 0, kind: input, shape index: {}]   ;;  %s3461_s1 = inlined_call_operand.hbm [shape: bf16[128,128], index: 1, kind: input, shape index: {}]   ;;  %s3462_s2 = inlined_call_operand.vmem [shape: bf16[640,128], index: 2, kind: input, shape index: {}]   ;;  %s3463_s3 = inlined_call_operand.vmem [shape: bf16[640,128], index: 3, kind: input, shape index: {}]   ;;  %s3464_s4 = inlined_call_operand.hbm [shape: bf16[128,128], index: 4, kind: input, shape index: {}]   ;;  %s3465_s5 = inlined_call_operand.hbm [shape: bf16[128,128], index: 5, kind: input, shape index: {}]   ;;  %s3466_s6 = inlined_call_operand.vmem [shape: f32[16,128], index: 6, kind: input, shape index: {}]   ;;  %s3467_s7 = inlined_call_operand.vmem [shape: f32[8,128], index: 7, kind: output, shape index: {}]  }
   0x1   :  { %13 = vsyncpa [#allocation7], 0  ;;  %s2849_s24 = smov [#allocation6]   ;;  %s2850_s26 = smov [#allocation4]  }
   0x2   :  { %s37_s25 = sshll.u32 %s2849_s24, 4  ;;  %s21_s27 = sshll.u32 %s2850_s26, 4  ;;  %s38_s25 = int_to_ptr.vmem [resolvable:$true] %s37_s25  ;;  %s22_s27 = int_to_ptr.vmem [resolvable:$true] %s21_s27 }
   0x3   :  { %s2793_s28 = scalar_lea.vmem %s38_s25, 1024  ;;  %p2798_p1 = scmp.lt.s32.totalorder %s38_s25, %s38_s25 }
   0x4   :  { %p2794_p0 = scmp.ne.s32.totalorder %s38_s25, %s2793_s28  ;;  %p2799_p2 = scmp.lt.s32.totalorder %s2793_s28, %s2793_s28 }
   0x6   :  { %p2800_p3 = por %p2799_p2, %p2798_p1 }
   0x8   :  { %p2801_p4 = pnand %p2800_p3, %p2794_p0 }
   0xa   :  { %2804 = shalt.err (!%p2801_p4)
}
   0xb   :  { %s2851_s29 = smov 64   ;;  %s2852_s30 = smov 4  }
   0xc   :  { %43 = dma.hbm_to_vmem [thread:$0]  %s3464_s4, 1024, %s38_s25, [#allocation7], %s2851_s29, %s2851_s29, %s2852_s30  }
   0xd   :  { %s2813_s10 = scalar_lea.vmem %s22_s27, 1024  ;;  %p2818_p6 = scmp.lt.s32.totalorder %s22_s27, %s22_s27 }
   0xe   :  { %p2814_p5 = scmp.ne.s32.totalorder %s22_s27, %s2813_s10  ;;  %p2819_p7 = scmp.lt.s32.totalorder %s2813_s10, %s2813_s10 }
  0x10   :  { %p2820_p8 = por %p2819_p7, %p2818_p6 }
  0x12   :  { %p2821_p9 = pnand %p2820_p8, %p2814_p5 }
  0x14   :  { %2824 = shalt.err (!%p2821_p9)
}
  0x15   :  { %27 = dma.hbm_to_vmem [thread:$0]  %s3461_s1, 1024, %s22_s27, [#allocation5], %s2851_s29, %s2851_s29, %s2852_s30  }
  0x16   :  { %s2853_s13 = smov [#allocation8]  }
  0x17   :  { %s49_s14 = sshll.u32 %s2853_s13, 4  ;;  %s50_s14 = int_to_ptr.vmem [resolvable:$true] %s49_s14 }
  0x18   :  { %s2833_s15 = scalar_lea.vmem %s50_s14, 1024  ;;  %p2838_p11 = scmp.lt.s32.totalorder %s50_s14, %s50_s14 }
  0x19   :  { %p2834_p10 = scmp.ne.s32.totalorder %s50_s14, %s2833_s15  ;;  %p2839_p12 = scmp.lt.s32.totalorder %s2833_s15, %s2833_s15 }
  0x1b   :  { %p2840_p13 = por %p2839_p12, %p2838_p11 }
  0x1d   :  { %p2841_p0 = pnand %p2840_p13, %p2834_p10 }
  0x1f   :  { %2844 = shalt.err (!%p2841_p0)
}
  0x20   :  { %55 = dma.hbm_to_vmem [thread:$0]  %s3465_s5, 1024, %s50_s14, [#allocation7], %s2851_s29, %s2851_s29, %s2852_s30  }
  0x21   :  { %2845 = dma.done.wait [#allocation5], 1024  }
  0x22   :  { %2846 = vsyncadd [#allocation5], 4294966272 }
  0x23   :  { %2847 = dma.done.wait [#allocation7], 2048  }
  0x24   :  { %2848 = vsyncadd [#allocation7], 4294965248  ;;  %v2854_v0 = vmov 0.0   ;;  %vm2855_vm0 = vmmov 0   ;;  %v2639_v1 = vld [vmem:[#allocation4 + $0x38] sm:$0xff]   ;;  %v2640_v2 = vld [vmem:[#allocation4 + $0x30] sm:$0xff]   ;;  %v94_v28 = vlaneseq }
  0x25   :  { %2284 = vmatprep.subr.bf16.mxu0 %v2854_v0  ;;  %68 = vst [vmem:[#allocation2] sm:$0xff] %v2854_v0  ;;  %69 = vst [vmem:[#allocation2 + $0x18] sm:$0xff] %v2854_v0  ;;  %2300 = vmatprep.mubr.msk.bf16.mxu0 %vm2855_vm0, %v2854_v0  ;;  %v2641_v3 = vld [vmem:[#allocation4 + $0x28] sm:$0xff]   ;;  %v2642_v4 = vld [vmem:[#allocation4 + $0x20] sm:$0xff]  }
  0x26   :  { %70 = vst [vmem:[#allocation2 + $0x30] sm:$0xff] %v2854_v0  ;;  %1767 = vst [vmem:[#allocation3] sm:$0xff] %v2854_v0  ;;  %2312 = vmatprep.subr.bf16.mxu1 %v2854_v0  ;;  %2328 = vmatprep.mubr.msk.bf16.mxu1 %vm2855_vm0, %v2854_v0  ;;  %v2643_v5 = vld [vmem:[#allocation4 + $0x18] sm:$0xff]   ;;  %v2644_v6 = vld [vmem:[#allocation4 + $0x10] sm:$0xff]   ;;  %v3002_v29 = vshrl.u32 %v94_v28, 7 }
  0x27   :  { %2285 = vmatpush3.bf16.msra.mxu0 %v2639_v1  ;;  %v2645_v7 = vld [vmem:[#allocation4 + $0x8] sm:$0xff]   ;;  %v2646_v8 = vld [vmem:[#allocation4] sm:$0xff]   ;;  %v2649_v11 = vld [vmem:[%s3460_s0 + $0x10] ss:$0 sps:$4 sm:$0xff]  }
  0x28   :  { %2286 = vmatprep.subr.bf16.mxu0 %v2854_v0  ;;  %v2647_v9 = vld [vmem:[%s3460_s0] sm:$0xff]   ;;  %v2648_v10 = vld [vmem:[%s3460_s0 + $0x8] sm:$0xff]   ;;  %v2650_v12 = vld [vmem:[%s3462_s2 + $0x78] sm:$0xff]   ;;  %v96_v30 = vsub.s32 0, %v3002_v29 }
  0x29   :  { %v2651_v13 = vld [vmem:[%s3462_s2 + $0x38] sm:$0xff]   ;;  %2313 = vmatpush3.bf16.msra.mxu1 %v2650_v12  ;;  %v2652_v14 = vld [vmem:[%s3462_s2 + $0x70] sm:$0xff]   ;;  %v2654_v16 = vld [vmem:[%s3462_s2 + $0x68] sm:$0xff]  }
  0x2a   :  { %2314 = vmatprep.subr.bf16.mxu1 %v2854_v0  ;;  %v2653_v15 = vld [vmem:[%s3462_s2 + $0x30] sm:$0xff]   ;;  %v2655_v17 = vld [vmem:[%s3462_s2 + $0x28] sm:$0xff]   ;;  %v2656_v18 = vld [vmem:[%s3462_s2 + $0x60] sm:$0xff]  }
  0x2b   :  { %2287 = vmatpush3.bf16.msra.mxu0 %v2640_v2  ;;  %v2657_v19 = vld [vmem:[%s3462_s2 + $0x20] sm:$0xff]   ;;  %v2658_v20 = vld [vmem:[%s3462_s2 + $0x58] sm:$0xff]   ;;  %v2660_v22 = vld [vmem:[%s3462_s2 + $0x50] sm:$0xff]  }
  0x2c   :  { %2288 = vmatprep.subr.bf16.mxu0 %v2854_v0  ;;  %v2659_v21 = vld [vmem:[%s3462_s2 + $0x18] sm:$0xff]   ;;  %v2661_v23 = vld [vmem:[%s3462_s2 + $0x10] sm:$0xff]   ;;  %v2662_v24 = vld [vmem:[%s3462_s2 + $0x48] sm:$0xff]  }
  0x2d   :  { %2315 = vmatpush3.bf16.msra.mxu1 %v2652_v14  ;;  %v2663_v25 = vld [vmem:[%s3462_s2 + $0x8] sm:$0xff]   ;;  %v2664_v26 = vld [vmem:[%s3462_s2 + $0x40] sm:$0xff]  }
  0x2e   :  { %2316 = vmatprep.subr.bf16.mxu1 %v2854_v0  ;;  %v2665_v27 = vld [vmem:[%s3462_s2] sm:$0xff]  }
  0x2f   :  { %2289 = vmatpush3.bf16.msra.mxu0 %v2641_v3  ;;  %v3008_v31 = vld [vmem:[%s3466_s6] sm:$0xff] }
  0x30   :  { %2290 = vmatprep.subr.bf16.mxu0 %v2854_v0  ;;  %v97_v32 = vrot.slane %v3008_v31, %v96_v30 }
  0x31   :  { %2317 = vmatpush3.bf16.msra.mxu1 %v2654_v16 }
  0x32   :  { %2318 = vmatprep.subr.bf16.mxu1 %v2854_v0 }
  0x33   :  { %2291 = vmatpush3.bf16.msra.mxu0 %v2642_v4 }
  0x34   :  { %2292 = vmatprep.subr.bf16.mxu0 %v2854_v0 }
  0x35   :  { %2319 = vmatpush3.bf16.msra.mxu1 %v2656_v18 }
  0x36   :  { %2320 = vmatprep.subr.bf16.mxu1 %v2854_v0 }
  0x37   :  { %2293 = vmatpush3.bf16.msra.mxu0 %v2643_v5 }
  0x38   :  { %2294 = vmatprep.subr.bf16.mxu0 %v2854_v0 }
  0x39   :  { %2321 = vmatpush3.bf16.msra.mxu1 %v2658_v20 }
  0x3a   :  { %2322 = vmatprep.subr.bf16.mxu1 %v2854_v0 }
  0x3b   :  { %2295 = vmatpush3.bf16.msra.mxu0 %v2644_v6 }
  0x3c   :  { %2296 = vmatprep.subr.bf16.mxu0 %v2854_v0 }
  0x3d   :  { %2323 = vmatpush3.bf16.msra.mxu1 %v2660_v22 }
  0x3e   :  { %2324 = vmatprep.subr.bf16.mxu1 %v2854_v0 }
  0x3f   :  { %2297 = vmatpush3.bf16.msra.mxu0 %v2645_v7 }
  0x40   :  { %2298 = vmatprep.subr.bf16.mxu0 %v2854_v0 }
  0x41   :  { %2325 = vmatpush3.bf16.msra.mxu1 %v2662_v24 }
  0x42   :  { %2326 = vmatprep.subr.bf16.mxu1 %v2854_v0 }
  0x43   :  { %2299 = vmatpush3.bf16.msra.mxu0 %v2646_v8 }
  0x44   :  { %2340 = vmatprep.subr.bf16.mxu0 %v2854_v0 }
  0x45   :  { %2327 = vmatpush3.bf16.msra.mxu1 %v2664_v26 }
  0x46   :  { %2301 = vmatmul.mubr.bf16.vlgmr.msra.gmra.mxu0 %v2647_v9  ;;  %2368 = vmatprep.subr.bf16.mxu1 %v2854_v0 }
  0x47   :  { %2304 = vmatprep.mubr.msk.bf16.mxu0 %vm2855_vm0, %v2854_v0  ;;  %2341 = vmatpush3.bf16.msra.mxu0 %v2651_v13 }
  0x48   :  { %2342 = vmatprep.subr.bf16.mxu0 %v2854_v0 }
  0x4b   :  { %2343 = vmatpush3.bf16.msra.mxu0 %v2653_v15 }
  0x4c   :  { %2344 = vmatprep.subr.bf16.mxu0 %v2854_v0 }
  0x4e   :  { %2305 = vmatmul.mubr.bf16.gmra.mxu0 %v2648_v10 }
  0x4f   :  { %2308 = vmatprep.mubr.msk.bf16.mxu0 %vm2855_vm0, %v2854_v0  ;;  %2345 = vmatpush3.bf16.msra.mxu0 %v2655_v17 }
  0x50   :  { %2346 = vmatprep.subr.bf16.mxu0 %v2854_v0 }
  0x53   :  { %2347 = vmatpush3.bf16.msra.mxu0 %v2657_v19 }
  0x54   :  { %2348 = vmatprep.subr.bf16.mxu0 %v2854_v0 }
  0x56   :  { %2309 = vmatmul.mubr.bf16.gmra.mxu0 %v2649_v11 }
  0x57   :  { %2356 = vmatprep.mubr.msk.bf16.mxu0 %vm2855_vm0, %v2854_v0  ;;  %2349 = vmatpush3.bf16.msra.mxu0 %v2659_v21 }
  0x58   :  { %2350 = vmatprep.subr.bf16.mxu0 %v2854_v0 }
  0x5b   :  { %2351 = vmatpush3.bf16.msra.mxu0 %v2661_v23 }
  0x5c   :  { %2352 = vmatprep.subr.bf16.mxu0 %v2854_v0 }
  0x5f   :  { %2353 = vmatpush3.bf16.msra.mxu0 %v2663_v25 }
  0x60   :  { %2354 = vmatprep.subr.bf16.mxu0 %v2854_v0 }
  0x63   :  { %2355 = vmatpush3.bf16.msra.mxu0 %v2665_v27 }
  0x64   :  { %2396 = vmatprep.subr.bf16.mxu0 %v2854_v0 }
 0x106   :  { %v196_v33 = vpop.f32.mrf.mxu0 }
 0x107   :  { %v3013_v34 = vadd.f32 %v196_v33, %v97_v32 }
 0x108   :  { %v2302_v35 = vpop.f32.mrf.mxu0 }
 0x109   :  { %v3016_v36 = vmul.f32 0.70710677, %v3013_v34 }
 0x10a   :  { %v199_v37 = vpop.f32.mrf.mxu0 }
 0x10b   :  { %v225_v38 = vand.u32 2147483647, %v3016_v36  ;;  %v3019_v39 = vadd.f32 %v199_v37, %v97_v32  ;;  %vm301_vm1 = vcmp.ge.f32.partialorder %v3016_v36, 0.0 }
 0x10c   :  { %v2303_v40 = vpop.f32.mrf.mxu0 }
 0x10d   :  { %v229_v41 = vmul.f32 0.3275911, %v225_v38  ;;  %v3022_v42 = vmul.f32 0.70710677, %v3019_v39  ;;  %v277_v54 = vsub.f32 0.0, %v225_v38 }
 0x10e   :  { %v204_v43 = vpop.f32.mrf.mxu0 }
 0x10f   :  { %v233_v44 = vadd.f32 1.0, %v229_v41  ;;  %v226_v45 = vand.u32 2147483647, %v3022_v42  ;;  %v281_v61 = vmul.f32 %v277_v54, %v225_v38  ;;  %vm302_vm2 = vcmp.ge.f32.partialorder %v3022_v42, 0.0 }
 0x110   :  { %v2306_v46 = vpop.f32.mrf.mxu0 }
 0x111   :  { %2746 = vrcp.f32 %v233_v44  ;;  %v230_v47 = vmul.f32 0.3275911, %v226_v45  ;;  %v278_v62 = vsub.f32 0.0, %v226_v45  ;;  %v285_v6 = vmul.f32 1.442695, %v281_v61 }
 0x112   :  { %v206_v48 = vpop.f32.mrf.mxu0 }
 0x113   :  { %v234_v49 = vadd.f32 1.0, %v230_v47  ;;  %v3025_v50 = vadd.f32 %v206_v48, %v97_v32  ;;  %v282_v7 = vmul.f32 %v278_v62, %v226_v45 }
 0x114   :  { %v2307_v51 = vpop.f32.mrf.mxu0 }
 0x115   :  { %2748 = vrcp.f32 %v234_v49  ;;  %v3028_v52 = vmul.f32 0.70710677, %v3025_v50  ;;  %v287_v14 = vmul.f32 1.442695, %v282_v7 }
 0x116   :  { %v211_v53 = vpop.f32.mrf.mxu0 }
 0x117   :  { %v227_v55 = vand.u32 2147483647, %v3028_v52  ;;  %v3031_v56 = vadd.f32 %v211_v53, %v97_v32  ;;  %vm303_vm3 = vcmp.ge.f32.partialorder %v3028_v52, 0.0 }
 0x118   :  { %v2310_v57 = vpop.f32.mrf.mxu0 }
 0x119   :  { %v231_v58 = vmul.f32 0.3275911, %v227_v55  ;;  %v3034_v59 = vmul.f32 0.70710677, %v3031_v56  ;;  %v279_v11 = vsub.f32 0.0, %v227_v55 }
 0x11a   :  { %v214_v60 = vpop.f32.mrf.mxu0 }
 0x11b   :  { %v235_v63 = vadd.f32 1.0, %v231_v58  ;;  %v228_v1 = vand.u32 2147483647, %v3034_v59  ;;  %v283_v17 = vmul.f32 %v279_v11, %v227_v55  ;;  %v323_v58 = vsub.s32 1, %v3002_v29 }
 0x11c   :  { %v2311_v2 = vpop.f32.mrf.mxu0  ;;  %vm304_vm4 = vcmp.ge.f32.partialorder %v3034_v59, 0.0 }
 0x11d   :  { %2750 = vrcp.f32 %v235_v63  ;;  %v232_v3 = vmul.f32 0.3275911, %v228_v1  ;;  %v280_v18 = vsub.f32 0.0, %v228_v1  ;;  %v289_v24 = vmul.f32 1.442695, %v283_v17 }
 0x11e   :  { %v2747_v4 = vpop.eup %2746 }
 0x11f   :  { %v241_v5 = vmul.f32 1.0614054, %v2747_v4  ;;  %v236_v8 = vadd.f32 1.0, %v232_v3  ;;  %v284_v25 = vmul.f32 %v280_v18, %v228_v1  ;;  %v331_v1 = vsub.s32 2, %v3002_v29 }
 0x120   :  { %v218_v18 = vmul.f32 0.5, %v3019_v39 }
 0x121   :  { %v245_v9 = vadd.f32 -1.4531521, %v241_v5  ;;  %2752 = vrcp.f32 %v236_v8  ;;  %v291_v38 = vmul.f32 1.442695, %v284_v25  ;;  %v324_v8 = vrot.slane %v3008_v31, %v323_v58 }
 0x122   :  { %v2749_v10 = vpop.eup %2748  ;;  %2754 = vpow2.f32 %v285_v6  ;;  %v217_v6 = vmul.f32 0.5, %v3013_v34 }
 0x123   :  { %v249_v12 = vmul.f32 %v2747_v4, %v245_v9  ;;  %v242_v13 = vmul.f32 1.0614054, %v2749_v10  ;;  %2756 = vpow2.f32 %v287_v14 }
 0x124   :  { %2758 = vpow2.f32 %v289_v24 }
 0x125   :  { %v253_v15 = vadd.f32 1.4214138, %v249_v12  ;;  %v246_v16 = vadd.f32 -1.4531521, %v242_v13  ;;  %2760 = vpow2.f32 %v291_v38  ;;  %v332_v13 = vrot.slane %v3008_v31, %v331_v1 }
 0x127   :  { %v257_v19 = vmul.f32 %v2747_v4, %v253_v15  ;;  %v250_v20 = vmul.f32 %v2749_v10, %v246_v16 }
 0x129   :  { %v261_v21 = vadd.f32 -0.28449672, %v257_v19  ;;  %v254_v22 = vadd.f32 1.4214138, %v250_v20 }
 0x12a   :  { %v2751_v23 = vpop.eup %2750 }
 0x12b   :  { %v265_v26 = vmul.f32 %v2747_v4, %v261_v21  ;;  %v258_v27 = vmul.f32 %v2749_v10, %v254_v22  ;;  %v243_v28 = vmul.f32 1.0614054, %v2751_v23 }
 0x12d   :  { %v269_v32 = vadd.f32 0.2548296, %v265_v26  ;;  %v262_v33 = vadd.f32 -0.28449672, %v258_v27  ;;  %v247_v35 = vadd.f32 -1.4531521, %v243_v28 }
 0x12e   :  { %v2753_v37 = vpop.eup %2752 }
 0x12f   :  { %v273_v40 = vmul.f32 %v2747_v4, %v269_v32  ;;  %v266_v41 = vmul.f32 %v2749_v10, %v262_v33  ;;  %v251_v43 = vmul.f32 %v2751_v23, %v247_v35  ;;  %v244_v44 = vmul.f32 1.0614054, %v2753_v37  ;;  %v2755_v45 = vpop.eup %2754 }
 0x130   :  { %v2757_v57 = vpop.eup %2756  ;;  %v219_v33 = vmul.f32 0.5, %v3025_v50  ;;  %v2667_v50 = vld [vmem:[%s3462_s2 + $0xf8] sm:$0xff]  }
 0x131   :  { %v293_v46 = vmul.f32 %v2755_v45, %v273_v40  ;;  %v270_v47 = vadd.f32 0.2548296, %v266_v41  ;;  %v255_v48 = vadd.f32 1.4214138, %v251_v43  ;;  %v248_v49 = vadd.f32 -1.4531521, %v244_v44  ;;  %v2759_v36 = vpop.eup %2758 }
 0x132   :  { %v2761_v24 = vpop.eup %2760  ;;  %v220_v43 = vmul.f32 0.5, %v3031_v56 }
 0x133   :  { %v297_v51 = vsub.f32 1.0, %v293_v46  ;;  %v274_v53 = vmul.f32 %v2749_v10, %v270_v47  ;;  %v259_v54 = vmul.f32 %v2751_v23, %v255_v48  ;;  %v252_v55 = vmul.f32 %v2753_v37, %v248_v49  ;;  %v2666_v47 = vld [vmem:[%s3462_s2 + $0xb8] sm:$0xff]  }
 0x135   :  { %v305_v60 = vsub.f32 0.0, %v297_v51  ;;  %v294_v61 = vmul.f32 %v2757_v57, %v274_v53  ;;  %v263_v62 = vadd.f32 -0.28449672, %v259_v54  ;;  %v256_v63 = vadd.f32 1.4214138, %v252_v55  ;;  %v2668_v55 = vld [vmem:[%s3462_s2 + $0xb0] sm:$0xff]  }
 0x136   :  { %v2669_v57 = vld [vmem:[%s3462_s2 + $0xf0] sm:$0xff]  }
 0x137   :  { %v309_v2 = vsel %vm301_vm1, %v297_v51, %v305_v60  ;;  %v298_v3 = vsub.f32 1.0, %v294_v61  ;;  %v267_v4 = vmul.f32 %v2751_v23, %v263_v62  ;;  %v260_v5 = vmul.f32 %v2753_v37, %v256_v63  ;;  %v2670_v60 = vld [vmem:[%s3462_s2 + $0xa8] sm:$0xff]  }
 0x138   :  { %v313_v7 = vadd.f32 1.0, %v309_v2  ;;  %v2671_v61 = vld [vmem:[%s3462_s2 + $0xe8] sm:$0xff]  }
 0x139   :  { %v306_v9 = vsub.f32 0.0, %v298_v3  ;;  %v271_v10 = vadd.f32 0.2548296, %v267_v4  ;;  %v264_v11 = vadd.f32 -0.28449672, %v260_v5  ;;  %v2672_v4 = vld [vmem:[%s3462_s2 + $0xa0] sm:$0xff]  }
 0x13a   :  { %v317_v12 = vmul.f32 %v313_v7, %v217_v6  ;;  %v2673_v5 = vld [vmem:[%s3462_s2 + $0xe0] sm:$0xff]  }
 0x13b   :  { %v310_v14 = vsel %vm302_vm2, %v298_v3, %v306_v9  ;;  %v275_v15 = vmul.f32 %v2751_v23, %v271_v10  ;;  %v268_v16 = vmul.f32 %v2753_v37, %v264_v11  ;;  %v2675_v9 = vld [vmem:[%s3462_s2 + $0xd8] sm:$0xff]  }
 0x13c   :  { %v325_v17 = vmul.f32 %v324_v8, %v317_v12  ;;  %v314_v19 = vadd.f32 1.0, %v310_v14  ;;  %v2676_v12 = vld [vmem:[%s3462_s2 + $0x90] sm:$0xff]   ;;  %v2679_v14 = vld [vmem:[%s3462_s2 + $0xc8] sm:$0xff]  }
 0x13d   :  { %v295_v34 = vmul.f32 %v2759_v36, %v275_v15  ;;  %v272_v20 = vadd.f32 0.2548296, %v268_v16  ;;  %v2678_v36 = vld [vmem:[%s3462_s2 + $0x88] sm:$0xff]   ;;  %v3125_v15 = vld [vmem:[#allocation2] sm:$0xff] }
 0x13e   :  { %v3045_v21 = vadd.f32 %v332_v13, %v325_v17  ;;  %v318_v22 = vmul.f32 %v314_v19, %v218_v18  ;;  %v2681_v16 = vld [vmem:[%s3462_s2 + $0xc0] sm:$0xff]   ;;  %v2682_v19 = vld [vmem:[%s3462_s2 + $0x138] sm:$0xff]  }
 0x13f   :  { %v299_v25 = vsub.f32 1.0, %v295_v34  ;;  %v276_v26 = vmul.f32 %v2753_v37, %v272_v20 }
 0x140   :  { %337 = vst [vmem:[#allocation2 + $0x8] sm:$0xff] %v3045_v21  ;;  %v326_v27 = vmul.f32 %v324_v8, %v318_v22  ;;  %v2683_v22 = vld [vmem:[%s3462_s2 + $0x130] sm:$0xff]  }
 0x141   :  { %v307_v42 = vsub.f32 0.0, %v299_v25  ;;  %v296_v28 = vmul.f32 %v2761_v24, %v276_v26 }
 0x142   :  { %v3048_v32 = vadd.f32 %v332_v13, %v326_v27 }
 0x143   :  { %v311_v23 = vsel %vm303_vm3, %v299_v25, %v307_v42  ;;  %v300_v39 = vsub.f32 1.0, %v296_v28  ;;  %v2684_v25 = vld [vmem:[%s3462_s2 + $0x128] sm:$0xff]   ;;  %v2685_v42 = vld [vmem:[%s3462_s2 + $0x120] sm:$0xff]  }
 0x144   :  { %338 = vst [vmem:[#allocation2 + $0x10] sm:$0xff] %v3048_v32  ;;  %v315_v35 = vadd.f32 1.0, %v311_v23  ;;  %v600_v34 = vpack.c.bf16 %v3048_v32, %v3045_v21  ;;  %v2686_v32 = vld [vmem:[%s3462_s2 + $0x118] sm:$0xff]  }
 0x145   :  { %v308_v38 = vsub.f32 0.0, %v300_v39 }
 0x146   :  { %v319_v40 = vmul.f32 %v315_v35, %v219_v33  ;;  %v2687_v33 = vld [vmem:[%s3462_s2 + $0x110] sm:$0xff]   ;;  %v2688_v35 = vld [vmem:[%s3462_s2 + $0x108] sm:$0xff]  }
 0x147   :  { %v312_v37 = vsel %vm304_vm4, %v300_v39, %v308_v38  ;;  %v365_v52 = vld [vmem:[#allocation2 + $0x7] sm:$0xff] }
 0x148   :  { %v327_v41 = vmul.f32 %v324_v8, %v319_v40  ;;  %v316_v44 = vadd.f32 1.0, %v312_v37  ;;  %v341_v49 = vld [vmem:[#allocation2 + $0x6] sm:$0xff] }
 0x149   :  { %v2689_v38 = vld [vmem:[%s3462_s2 + $0x100] sm:$0xff]  }
 0x14a   :  { %v3055_v45 = vadd.f32 %v332_v13, %v327_v41  ;;  %v320_v46 = vmul.f32 %v316_v44, %v220_v43 }
 0x14b   :  { %v366_v48 = vld [vmem:[#allocation2 + $0xf] sm:$0xff]  ;;  %v367_v58 = vld [vmem:[#allocation2 + $0x17] sm:$0xff] }
 0x14c   :  { %v342_v59 = vld [vmem:[#allocation2 + $0xe] sm:$0xff]  ;;  %339 = vst [vmem:[#allocation2 + $0x20] sm:$0xff] %v3055_v45  ;;  %v328_v51 = vmul.f32 %v324_v8, %v320_v46  ;;  %v370_v56 = vpack.c.bf16 %v366_v48, %v365_v52  ;;  %v343_v63 = vld [vmem:[#allocation2 + $0x16] sm:$0xff]  ;;  %v601_v26 = vpack.c.bf16 %v3055_v45, %v3125_v15 }
 0x14d   :  { %v346_v53 = vpack.c.bf16 %v342_v59, %v341_v49  ;;  %v2674_v8 = vld [vmem:[%s3462_s2 + $0x98] sm:$0xff]   ;;  %v726_v17 = vld [vmem:[#allocation2 + $0x9] sm:$0xff] }
 0x14e   :  { %v3064_v54 = vadd.f32 %v332_v13, %v328_v51  ;;  %2329 = vmatmul.mubr.bf16.vlgmr.msra.gmra.mxu1 %v370_v56  ;;  %v2677_v13 = vld [vmem:[%s3462_s2 + $0xd0] sm:$0xff]   ;;  %v2694_v59 = vld [vmem:[%s3463_s3 + $0x68] sm:$0xff]   ;;  %v2696_v56 = vld [vmem:[%s3463_s3 + $0x60] sm:$0xff]  }
 0x14f   :  { %2357 = vmatmul.mubr.bf16.vlgmr.msra.gmra.mxu0 %v346_v53  ;;  %2369 = vmatpush3.bf16.msra.mxu1 %v2666_v47  ;;  %v727_v18 = vld [vmem:[#allocation2 + $0x11] sm:$0xff]  ;;  %v2695_v51 = vld [vmem:[%s3463_s3 + $0x28] sm:$0xff]   ;;  %v2697_v53 = vld [vmem:[%s3463_s3 + $0x20] sm:$0xff]  }
 0x150   :  { %2397 = vmatpush3.bf16.msra.mxu0 %v2667_v50  ;;  %340 = vst [vmem:[#allocation2 + $0x28] sm:$0xff] %v3064_v54  ;;  %2370 = vmatprep.subr.bf16.mxu1 %v2854_v0  ;;  %v731_v20 = vpack.c.bf16 %v727_v18, %v726_v17  ;;  %v602_v23 = vpack.c.bf16 %v3064_v54, %v3064_v54  ;;  %v857_v40 = vld [vmem:[#allocation2 + $0xa] sm:$0xff]  ;;  %v858_v37 = vld [vmem:[#allocation2 + $0x12] sm:$0xff] }
 0x151   :  { %2398 = vmatprep.subr.bf16.mxu0 %v2854_v0  ;;  %2332 = vmatprep.mubr.msk.bf16.mxu1 %vm2855_vm0, %v2854_v0  ;;  %v862_v41 = vpack.c.bf16 %v858_v37, %v857_v40  ;;  %v2690_v47 = vld [vmem:[%s3463_s3 + $0x78] sm:$0xff]   ;;  %v2692_v48 = vld [vmem:[%s3463_s3 + $0x70] sm:$0xff]  }
 0x152   :  { %2360 = vmatprep.mubr.msk.bf16.mxu0 %vm2855_vm0, %v2854_v0  ;;  %v2691_v50 = vld [vmem:[%s3463_s3 + $0x38] sm:$0xff]   ;;  %v2693_v49 = vld [vmem:[%s3463_s3 + $0x30] sm:$0xff]  }
 0x153   :  { %2371 = vmatpush3.bf16.msra.mxu1 %v2668_v55  ;;  %v368_v62 = vld [vmem:[#allocation2 + $0x1f] sm:$0xff] }
 0x154   :  { %2399 = vmatpush3.bf16.msra.mxu0 %v2669_v57  ;;  %v344_v1 = vld [vmem:[#allocation2 + $0x1e] sm:$0xff]  ;;  %2372 = vmatprep.subr.bf16.mxu1 %v2854_v0  ;;  %v371_v2 = vpack.c.bf16 %v368_v62, %v367_v58  ;;  %v2700_v57 = vld [vmem:[%s3463_s3 + $0x50] sm:$0xff]   ;;  %v2702_v62 = vld [vmem:[%s3463_s3 + $0x48] sm:$0xff]  }
 0x155   :  { %2400 = vmatprep.subr.bf16.mxu0 %v2854_v0  ;;  %v347_v3 = vpack.c.bf16 %v344_v1, %v343_v63  ;;  %v728_v24 = vld [vmem:[#allocation2 + $0x19] sm:$0xff]  ;;  %v2701_v58 = vld [vmem:[%s3463_s3 + $0x10] sm:$0xff]   ;;  %v2703_v63 = vld [vmem:[%s3463_s3 + $0x8] sm:$0xff]  }
 0x156   :  { %2333 = vmatmul.mubr.bf16.gmra.mxu1 %v371_v2  ;;  %v859_v44 = vld [vmem:[#allocation2 + $0x1a] sm:$0xff] }
 0x157   :  { %2361 = vmatmul.mubr.bf16.gmra.mxu0 %v347_v3  ;;  %2373 = vmatpush3.bf16.msra.mxu1 %v2670_v60  ;;  %v369_v6 = vld [vmem:[#allocation2 + $0x27] sm:$0xff]  ;;  %v2698_v54 = vld [vmem:[%s3463_s3 + $0x58] sm:$0xff]  }
 0x158   :  { %2401 = vmatpush3.bf16.msra.mxu0 %v2671_v61  ;;  %2374 = vmatprep.subr.bf16.mxu1 %v2854_v0  ;;  %v345_v7 = vld [vmem:[#allocation2 + $0x26] sm:$0xff]  ;;  %v372_v10 = vpack.c.bf16 %v369_v6, %v369_v6  ;;  %v2699_v55 = vld [vmem:[%s3463_s3 + $0x18] sm:$0xff]  }
 0x159   :  { %2402 = vmatprep.subr.bf16.mxu0 %v2854_v0  ;;  %2336 = vmatprep.mubr.msk.bf16.mxu1 %vm2855_vm0, %v2854_v0  ;;  %v348_v11 = vpack.c.bf16 %v345_v7, %v345_v7  ;;  %v729_v21 = vld [vmem:[#allocation2 + $0x21] sm:$0xff]  ;;  %v730_v28 = vld [vmem:[#allocation2 + $0x29] sm:$0xff] }
 0x15a   :  { %2364 = vmatprep.mubr.msk.bf16.mxu0 %vm2855_vm0, %v2854_v0  ;;  %v732_v27 = vpack.c.bf16 %v729_v21, %v728_v24  ;;  %v733_v39 = vpack.c.bf16 %v730_v28, %v730_v28  ;;  %v860_v43 = vld [vmem:[#allocation2 + $0x22] sm:$0xff]  ;;  %v861_v46 = vld [vmem:[#allocation2 + $0x2a] sm:$0xff] }
 0x15b   :  { %2375 = vmatpush3.bf16.msra.mxu1 %v2672_v4  ;;  %v863_v45 = vpack.c.bf16 %v860_v43, %v859_v44  ;;  %v864_v52 = vpack.c.bf16 %v861_v46, %v861_v46  ;;  %v2705_v6 = vld [vmem:[%s3463_s3] sm:$0xff]  }
 0x15c   :  { %2403 = vmatpush3.bf16.msra.mxu0 %v2673_v5  ;;  %2376 = vmatprep.subr.bf16.mxu1 %v2854_v0  ;;  %v2704_v5 = vld [vmem:[%s3463_s3 + $0x40] sm:$0xff]  }
 0x15d   :  { %2404 = vmatprep.subr.bf16.mxu0 %v2854_v0 }
 0x15e   :  { %2337 = vmatmul.mubr.bf16.gmra.mxu1 %v372_v10 }
 0x15f   :  { %2365 = vmatmul.mubr.bf16.gmra.mxu0 %v348_v11  ;;  %2377 = vmatpush3.bf16.msra.mxu1 %v2674_v8 }
 0x160   :  { %2405 = vmatpush3.bf16.msra.mxu0 %v2675_v9  ;;  %2378 = vmatprep.subr.bf16.mxu1 %v2854_v0 }
 0x161   :  { %2406 = vmatprep.subr.bf16.mxu0 %v2854_v0  ;;  %2384 = vmatprep.mubr.msk.bf16.mxu1 %vm2855_vm0, %v2854_v0 }
 0x162   :  { %2412 = vmatprep.mubr.msk.bf16.mxu0 %vm2855_vm0, %v2854_v0  ;;  %v2680_v0 = vld [vmem:[%s3462_s2 + $0x80] sm:$0xff]  }
 0x163   :  { %2379 = vmatpush3.bf16.msra.mxu1 %v2676_v12 }
 0x164   :  { %2407 = vmatpush3.bf16.msra.mxu0 %v2677_v13  ;;  %2380 = vmatprep.subr.bf16.mxu1 %v3125_v15 }
 0x165   :  { %2408 = vmatprep.subr.bf16.mxu0 %v3125_v15 }
 0x167   :  { %2381 = vmatpush3.bf16.msra.mxu1 %v2678_v36 }
 0x168   :  { %2409 = vmatpush3.bf16.msra.mxu0 %v2679_v14  ;;  %2382 = vmatprep.subr.bf16.mxu1 %v3125_v15 }
 0x169   :  { %2410 = vmatprep.subr.bf16.mxu0 %v3125_v15 }
 0x16b   :  { %2383 = vmatpush3.bf16.msra.mxu1 %v2680_v0 }
 0x16c   :  { %2411 = vmatpush3.bf16.msra.mxu0 %v2681_v16  ;;  %2424 = vmatprep.subr.bf16.mxu1 %v3125_v15 }
 0x16d   :  { %2452 = vmatprep.subr.bf16.mxu0 %v3125_v15 }
 0x16e   :  { %2385 = vmatmul.mubr.bf16.vlgmr.msra.gmra.mxu1 %v600_v34 }
 0x16f   :  { %2413 = vmatmul.mubr.bf16.vlgmr.msra.gmra.mxu0 %v731_v20  ;;  %2425 = vmatpush3.bf16.msra.mxu1 %v2682_v19 }
 0x170   :  { %2388 = vmatprep.mubr.msk.bf16.mxu1 %vm2855_vm0, %v3125_v15  ;;  %2426 = vmatprep.subr.bf16.mxu1 %v3125_v15 }
 0x171   :  { %2416 = vmatprep.mubr.msk.bf16.mxu0 %vm2855_vm0, %v3125_v15  ;;  %2453 = vmatpush3.bf16.msra.mxu0 %v2690_v47 }
 0x172   :  { %2454 = vmatprep.subr.bf16.mxu0 %v3125_v15 }
 0x173   :  { %2427 = vmatpush3.bf16.msra.mxu1 %v2683_v22 }
 0x174   :  { %2428 = vmatprep.subr.bf16.mxu1 %v3125_v15 }
 0x175   :  { %2455 = vmatpush3.bf16.msra.mxu0 %v2692_v48 }
 0x176   :  { %2389 = vmatmul.mubr.bf16.gmra.mxu1 %v601_v26  ;;  %2456 = vmatprep.subr.bf16.mxu0 %v3125_v15 }
 0x177   :  { %2417 = vmatmul.mubr.bf16.gmra.mxu0 %v732_v27  ;;  %2429 = vmatpush3.bf16.msra.mxu1 %v2684_v25 }
 0x178   :  { %2392 = vmatprep.mubr.msk.bf16.mxu1 %vm2855_vm0, %v3125_v15  ;;  %2430 = vmatprep.subr.bf16.mxu1 %v3125_v15 }
 0x179   :  { %2420 = vmatprep.mubr.msk.bf16.mxu0 %vm2855_vm0, %v3125_v15  ;;  %2457 = vmatpush3.bf16.msra.mxu0 %v2694_v59 }
 0x17a   :  { %2458 = vmatprep.subr.bf16.mxu0 %v3125_v15 }
 0x17b   :  { %2431 = vmatpush3.bf16.msra.mxu1 %v2685_v42 }
 0x17c   :  { %2432 = vmatprep.subr.bf16.mxu1 %v3125_v15 }
 0x17d   :  { %2459 = vmatpush3.bf16.msra.mxu0 %v2696_v56  ;;  %v990_v56 = vsub.s32 3, %v3002_v29 }
 0x17e   :  { %2393 = vmatmul.mubr.bf16.gmra.mxu1 %v602_v23  ;;  %2460 = vmatprep.subr.bf16.mxu0 %v3125_v15 }
 0x17f   :  { %2421 = vmatmul.mubr.bf16.gmra.mxu0 %v733_v39  ;;  %2433 = vmatpush3.bf16.msra.mxu1 %v2686_v32 }
 0x180   :  { %2440 = vmatprep.mubr.msk.bf16.mxu1 %vm2855_vm0, %v3125_v15  ;;  %2434 = vmatprep.subr.bf16.mxu1 %v3125_v15 }
 0x181   :  { %2468 = vmatprep.mubr.msk.bf16.mxu0 %vm2855_vm0, %v3125_v15  ;;  %2461 = vmatpush3.bf16.msra.mxu0 %v2698_v54 }
 0x182   :  { %2462 = vmatprep.subr.bf16.mxu0 %v3125_v15 }
 0x183   :  { %2435 = vmatpush3.bf16.msra.mxu1 %v2687_v33 }
 0x184   :  { %2436 = vmatprep.subr.bf16.mxu1 %v3125_v15 }
 0x185   :  { %2463 = vmatpush3.bf16.msra.mxu0 %v2700_v57  ;;  %v991_v57 = vrot.slane %v3008_v31, %v990_v56 }
 0x186   :  { %2464 = vmatprep.subr.bf16.mxu0 %v3125_v15 }
 0x187   :  { %2437 = vmatpush3.bf16.msra.mxu1 %v2688_v35 }
 0x188   :  { %2438 = vmatprep.subr.bf16.mxu1 %v3125_v15 }
 0x189   :  { %2465 = vmatpush3.bf16.msra.mxu0 %v2702_v62 }
 0x18a   :  { %2466 = vmatprep.subr.bf16.mxu0 %v3125_v15 }
 0x18b   :  { %2439 = vmatpush3.bf16.msra.mxu1 %v2689_v38 }
 0x18c   :  { %2480 = vmatprep.subr.bf16.mxu1 %v3125_v15 }
 0x18d   :  { %2467 = vmatpush3.bf16.msra.mxu0 %v2704_v5 }
 0x18e   :  { %2441 = vmatmul.mubr.bf16.vlgmr.msra.gmra.mxu1 %v862_v41  ;;  %2508 = vmatprep.subr.bf16.mxu0 %v3125_v15 }
 0x18f   :  { %2444 = vmatprep.mubr.msk.bf16.mxu1 %vm2855_vm0, %v3125_v15  ;;  %2481 = vmatpush3.bf16.msra.mxu1 %v2691_v50 }
 0x190   :  { %2482 = vmatprep.subr.bf16.mxu1 %v3125_v15 }
 0x193   :  { %2483 = vmatpush3.bf16.msra.mxu1 %v2693_v49 }
 0x194   :  { %2484 = vmatprep.subr.bf16.mxu1 %v3125_v15 }
 0x196   :  { %2445 = vmatmul.mubr.bf16.gmra.mxu1 %v863_v45 }
 0x197   :  { %2448 = vmatprep.mubr.msk.bf16.mxu1 %vm2855_vm0, %v3125_v15  ;;  %2485 = vmatpush3.bf16.msra.mxu1 %v2695_v51 }
 0x198   :  { %2486 = vmatprep.subr.bf16.mxu1 %v3125_v15 }
 0x19b   :  { %2487 = vmatpush3.bf16.msra.mxu1 %v2697_v53 }
 0x19c   :  { %2488 = vmatprep.subr.bf16.mxu1 %v3125_v15 }
 0x19e   :  { %2449 = vmatmul.mubr.bf16.gmra.mxu1 %v864_v52 }
 0x19f   :  { %2496 = vmatprep.mubr.msk.bf16.mxu1 %vm2855_vm0, %v3125_v15  ;;  %2489 = vmatpush3.bf16.msra.mxu1 %v2699_v55 }
 0x1a0   :  { %2490 = vmatprep.subr.bf16.mxu1 %v3125_v15 }
 0x1a3   :  { %2491 = vmatpush3.bf16.msra.mxu1 %v2701_v58 }
 0x1a4   :  { %2492 = vmatprep.subr.bf16.mxu1 %v3125_v15 }
 0x1a7   :  { %2493 = vmatpush3.bf16.msra.mxu1 %v2703_v63 }
 0x1a8   :  { %2494 = vmatprep.subr.bf16.mxu1 %v3125_v15 }
 0x1ab   :  { %2495 = vmatpush3.bf16.msra.mxu1 %v2705_v6 }
 0x1ac   :  { %2536 = vmatprep.subr.bf16.mxu1 %v3125_v15 }
 0x20e   :  { %v471_v60 = vpop.f32.mrf.mxu1 }
 0x20f   :  { %v574_v61 = vpop.f32.mrf.mxu0 }
 0x210   :  { %v2330_v1 = vpop.f32.mrf.mxu1  ;;  %v575_v59 = vadd.f32 %v574_v61, %v471_v60 }
 0x211   :  { %v2358_v2 = vpop.f32.mrf.mxu0 }
 0x212   :  { %v474_v3 = vpop.f32.mrf.mxu1 }
 0x213   :  { %v577_v4 = vpop.f32.mrf.mxu0 }
 0x214   :  { %v2331_v7 = vpop.f32.mrf.mxu1  ;;  %v578_v53 = vadd.f32 %v577_v4, %v474_v3 }
 0x215   :  { %v2359_v8 = vpop.f32.mrf.mxu0 }
 0x216   :  { %v479_v9 = vpop.f32.mrf.mxu1 }
 0x217   :  { %v582_v10 = vpop.f32.mrf.mxu0 }
 0x218   :  { %v2334_v11 = vpop.f32.mrf.mxu1 }
 0x219   :  { %v2362_v12 = vpop.f32.mrf.mxu0 }
 0x21a   :  { %v481_v13 = vpop.f32.mrf.mxu1 }
 0x21b   :  { %v584_v36 = vpop.f32.mrf.mxu0 }
 0x21c   :  { %v2335_v14 = vpop.f32.mrf.mxu1  ;;  %v585_v60 = vadd.f32 %v584_v36, %v481_v13 }
 0x21d   :  { %v2363_v0 = vpop.f32.mrf.mxu0 }
 0x21e   :  { %v486_v16 = vpop.f32.mrf.mxu1 }
 0x21f   :  { %v589_v17 = vpop.f32.mrf.mxu0 }
 0x220   :  { %v2338_v18 = vpop.f32.mrf.mxu1  ;;  %v590_v10 = vadd.f32 %v589_v17, %v486_v16 }
 0x221   :  { %v2366_v19 = vpop.f32.mrf.mxu0 }
 0x222   :  { %v489_v34 = vpop.f32.mrf.mxu1 }
 0x223   :  { %v592_v20 = vpop.f32.mrf.mxu0 }
 0x224   :  { %v2339_v22 = vpop.f32.mrf.mxu1 }
 0x225   :  { %v2367_v21 = vpop.f32.mrf.mxu0 }
 0x22e   :  { %v701_v24 = vpop.f32.mrf.mxu1 }
 0x22f   :  { %v832_v25 = vpop.f32.mrf.mxu0  ;;  %v722_v51 = vadd.f32 %v701_v24, %v575_v59 }
 0x230   :  { %v2386_v26 = vpop.f32.mrf.mxu1 }
 0x231   :  { %v2414_v27 = vpop.f32.mrf.mxu0  ;;  %v853_v54 = vadd.f32 %v832_v25, %v722_v51 }
 0x232   :  { %v704_v42 = vpop.f32.mrf.mxu1 }
 0x233   :  { %v835_v28 = vpop.f32.mrf.mxu0  ;;  %v723_v55 = vadd.f32 %v704_v42, %v578_v53 }
 0x234   :  { %v2387_v32 = vpop.f32.mrf.mxu1 }
 0x235   :  { %v2415_v23 = vpop.f32.mrf.mxu0  ;;  %v854_v1 = vadd.f32 %v835_v28, %v723_v55 }
 0x236   :  { %v709_v39 = vpop.f32.mrf.mxu1 }
 0x237   :  { %v840_v33 = vpop.f32.mrf.mxu0 }
 0x238   :  { %v2390_v35 = vpop.f32.mrf.mxu1 }
 0x239   :  { %v2418_v38 = vpop.f32.mrf.mxu0 }
 0x23a   :  { %v711_v40 = vpop.f32.mrf.mxu1 }
 0x23b   :  { %v842_v37 = vpop.f32.mrf.mxu0  ;;  %v724_v4 = vadd.f32 %v711_v40, %v585_v60 }
 0x23c   :  { %v2391_v41 = vpop.f32.mrf.mxu1 }
 0x23d   :  { %v2419_v43 = vpop.f32.mrf.mxu0  ;;  %v855_v34 = vadd.f32 %v842_v37, %v724_v4 }
 0x23e   :  { %v716_v44 = vpop.f32.mrf.mxu1 }
 0x23f   :  { %v847_v45 = vpop.f32.mrf.mxu0  ;;  %v725_v0 = vadd.f32 %v716_v44, %v590_v10 }
 0x240   :  { %v2394_v46 = vpop.f32.mrf.mxu1 }
 0x241   :  { %v2422_v52 = vpop.f32.mrf.mxu0  ;;  %v856_v21 = vadd.f32 %v847_v45, %v725_v0 }
 0x242   :  { %v719_v47 = vpop.f32.mrf.mxu1 }
 0x243   :  { %v850_v50 = vpop.f32.mrf.mxu0 }
 0x244   :  { %v2395_v48 = vpop.f32.mrf.mxu1 }
 0x245   :  { %v2423_v49 = vpop.f32.mrf.mxu0 }
 0x24e   :  { %v963_v58 = vpop.f32.mrf.mxu1 }
 0x24f   :  { %v984_v62 = vadd.f32 %v963_v58, %v853_v54 }
 0x250   :  { %v2442_v63 = vpop.f32.mrf.mxu1 }
 0x251   :  { %v3261_v2 = vadd.f32 %v991_v57, %v984_v62 }
 0x252   :  { %v966_v5 = vpop.f32.mrf.mxu1 }
 0x253   :  { %v3264_v6 = vmul.f32 0.70710677, %v3261_v2  ;;  %v985_v7 = vadd.f32 %v966_v5, %v854_v1 }
 0x254   :  { %v2443_v61 = vpop.f32.mrf.mxu1 }
 0x255   :  { %v1004_v8 = vand.u32 2147483647, %v3264_v6  ;;  %v3267_v3 = vadd.f32 %v991_v57, %v985_v7  ;;  %vm1080_vm5 = vcmp.ge.f32.partialorder %v3264_v6, 0.0 }
 0x256   :  { %v971_v9 = vpop.f32.mrf.mxu1 }
 0x257   :  { %v1008_v11 = vmul.f32 0.3275911, %v1004_v8  ;;  %v3270_v12 = vmul.f32 0.70710677, %v3267_v3  ;;  %v1056_v42 = vsub.f32 0.0, %v1004_v8 }
 0x258   :  { %v2446_v14 = vpop.f32.mrf.mxu1 }
 0x259   :  { %v1012_v18 = vadd.f32 1.0, %v1008_v11  ;;  %v1005_v19 = vand.u32 2147483647, %v3270_v12  ;;  %v1060_v38 = vmul.f32 %v1056_v42, %v1004_v8  ;;  %vm1081_vm6 = vcmp.ge.f32.partialorder %v3270_v12, 0.0 }
 0x25a   :  { %v973_v20 = vpop.f32.mrf.mxu1 }
 0x25b   :  { %2762 = vrcp.f32 %v1012_v18  ;;  %v1009_v13 = vmul.f32 0.3275911, %v1005_v19  ;;  %v986_v36 = vadd.f32 %v973_v20, %v855_v34  ;;  %v1057_v40 = vsub.f32 0.0, %v1005_v19 }
 0x25c   :  { %v2447_v22 = vpop.f32.mrf.mxu1  ;;  %v1064_v46 = vmul.f32 1.442695, %v1060_v38 }
 0x25d   :  { %v1013_v24 = vadd.f32 1.0, %v1009_v13  ;;  %v3273_v25 = vadd.f32 %v991_v57, %v986_v36  ;;  %v1061_v52 = vmul.f32 %v1057_v40, %v1005_v19  ;;  %v1110_v40 = vsub.s32 5, %v3002_v29 }
 0x25e   :  { %v978_v16 = vpop.f32.mrf.mxu1 }
 0x25f   :  { %2764 = vrcp.f32 %v1013_v24  ;;  %v987_v17 = vadd.f32 %v978_v16, %v856_v21  ;;  %v3276_v26 = vmul.f32 0.70710677, %v3273_v25  ;;  %v1066_v51 = vmul.f32 1.442695, %v1061_v52 }
 0x260   :  { %v2450_v27 = vpop.f32.mrf.mxu1 }
 0x261   :  { %v3278_v28 = vadd.f32 %v991_v57, %v987_v17  ;;  %v1006_v32 = vand.u32 2147483647, %v3276_v26  ;;  %vm1082_vm7 = vcmp.ge.f32.partialorder %v3276_v26, 0.0  ;;  %v2706_v26 = vld [vmem:[%s3463_s3 + $0xb8] sm:$0xff]  }
 0x262   :  { %v981_v23 = vpop.f32.mrf.mxu1 }
 0x263   :  { %v3282_v39 = vmul.f32 0.70710677, %v3278_v28  ;;  %v1010_v33 = vmul.f32 0.3275911, %v1006_v32  ;;  %v1058_v56 = vsub.f32 0.0, %v1006_v32 }
 0x264   :  { %v2451_v35 = vpop.f32.mrf.mxu1 }
 0x265   :  { %v1007_v37 = vand.u32 2147483647, %v3282_v39  ;;  %v1014_v41 = vadd.f32 1.0, %v1010_v33  ;;  %v1062_v62 = vmul.f32 %v1058_v56, %v1006_v32  ;;  %v1102_v32 = vsub.s32 4, %v3002_v29 }
 0x266   :  { %vm1083_vm8 = vcmp.ge.f32.partialorder %v3282_v39, 0.0 }
 0x267   :  { %v1011_v43 = vmul.f32 0.3275911, %v1007_v37  ;;  %2766 = vrcp.f32 %v1014_v41  ;;  %v1059_v58 = vsub.f32 0.0, %v1007_v37  ;;  %v1068_v4 = vmul.f32 1.442695, %v1062_v62 }
 0x268   :  { %v2763_v44 = vpop.eup %2762  ;;  %v1103_v52 = vrot.slane %v3008_v31, %v1102_v32 }
 0x269   :  { %v1020_v45 = vmul.f32 1.0614054, %v2763_v44  ;;  %v1015_v47 = vadd.f32 1.0, %v1011_v43  ;;  %v1063_v61 = vmul.f32 %v1059_v58, %v1007_v37 }
 0x26b   :  { %v1024_v50 = vadd.f32 -1.4531521, %v1020_v45  ;;  %2768 = vrcp.f32 %v1015_v47  ;;  %v1070_v34 = vmul.f32 1.442695, %v1063_v61  ;;  %v996_v45 = vmul.f32 0.5, %v3261_v2 }
 0x26c   :  { %v2765_v48 = vpop.eup %2764  ;;  %2770 = vpow2.f32 %v1064_v46 }
 0x26d   :  { %v1028_v49 = vmul.f32 %v2763_v44, %v1024_v50  ;;  %v1021_v59 = vmul.f32 1.0614054, %v2765_v48  ;;  %2772 = vpow2.f32 %v1066_v51 }
 0x26e   :  { %2774 = vpow2.f32 %v1068_v4 }
 0x26f   :  { %v1032_v53 = vadd.f32 1.4214138, %v1028_v49  ;;  %v1025_v54 = vadd.f32 -1.4531521, %v1021_v59  ;;  %2776 = vpow2.f32 %v1070_v34  ;;  %v1111_v59 = vrot.slane %v3008_v31, %v1110_v40 }
 0x271   :  { %v1036_v55 = vmul.f32 %v2763_v44, %v1032_v53  ;;  %v1029_v57 = vmul.f32 %v2765_v48, %v1025_v54  ;;  %v997_v54 = vmul.f32 0.5, %v3267_v3 }
 0x273   :  { %v1040_v63 = vadd.f32 -0.28449672, %v1036_v55  ;;  %v1033_v1 = vadd.f32 1.4214138, %v1029_v57 }
 0x274   :  { %v2767_v5 = vpop.eup %2766 }
 0x275   :  { %v1044_v7 = vmul.f32 %v2763_v44, %v1040_v63  ;;  %v1037_v60 = vmul.f32 %v2765_v48, %v1033_v1  ;;  %v1022_v8 = vmul.f32 1.0614054, %v2767_v5 }
 0x277   :  { %v1048_v9 = vadd.f32 0.2548296, %v1044_v7  ;;  %v1041_v10 = vadd.f32 -0.28449672, %v1037_v60  ;;  %v1026_v14 = vadd.f32 -1.4531521, %v1022_v8 }
 0x278   :  { %v2769_v11 = vpop.eup %2768 }
 0x279   :  { %v1052_v0 = vmul.f32 %v2763_v44, %v1048_v9  ;;  %v1045_v18 = vmul.f32 %v2765_v48, %v1041_v10  ;;  %v1023_v19 = vmul.f32 1.0614054, %v2769_v11  ;;  %v2771_v20 = vpop.eup %2770  ;;  %v1030_v13 = vmul.f32 %v2767_v5, %v1026_v14 }
 0x27a   :  { %v2773_v42 = vpop.eup %2772  ;;  %v998_v9 = vmul.f32 0.5, %v3273_v25  ;;  %v2707_v25 = vld [vmem:[%s3463_s3 + $0xf8] sm:$0xff]  }
 0x27b   :  { %v1072_v36 = vmul.f32 %v2771_v20, %v1052_v0  ;;  %v1049_v22 = vadd.f32 0.2548296, %v1045_v18  ;;  %v1027_v21 = vadd.f32 -1.4531521, %v1023_v19  ;;  %v1034_v24 = vadd.f32 1.4214138, %v1030_v13  ;;  %v2775_v2 = vpop.eup %2774 }
 0x27c   :  { %v2777_v60 = vpop.eup %2776  ;;  %v999_v18 = vmul.f32 0.5, %v3278_v28 }
 0x27d   :  { %v1076_v16 = vsub.f32 1.0, %v1072_v36  ;;  %v1053_v17 = vmul.f32 %v2765_v48, %v1049_v22  ;;  %v1031_v27 = vmul.f32 %v2769_v11, %v1027_v21  ;;  %v1038_v23 = vmul.f32 %v2767_v5, %v1034_v24 }
 0x27f   :  { %v1084_v33 = vsub.f32 0.0, %v1076_v16  ;;  %v1073_v35 = vmul.f32 %v2773_v42, %v1053_v17  ;;  %v1035_v38 = vadd.f32 1.4214138, %v1031_v27  ;;  %v1042_v37 = vadd.f32 -0.28449672, %v1038_v23  ;;  %v2708_v27 = vld [vmem:[%s3463_s3 + $0xb0] sm:$0xff]  }
 0x280   :  { %v2709_v42 = vld [vmem:[%s3463_s3 + $0xf0] sm:$0xff]   ;;  %v2710_v23 = vld [vmem:[%s3463_s3 + $0xa8] sm:$0xff]  }
 0x281   :  { %v1088_v41 = vsel %vm1080_vm5, %v1076_v16, %v1084_v33  ;;  %v1077_v43 = vsub.f32 1.0, %v1073_v35  ;;  %v1039_v44 = vmul.f32 %v2769_v11, %v1035_v38  ;;  %v1046_v47 = vmul.f32 %v2767_v5, %v1042_v37  ;;  %v2711_v33 = vld [vmem:[%s3463_s3 + $0xe8] sm:$0xff]  }
 0x282   :  { %v1092_v46 = vadd.f32 1.0, %v1088_v41 }
 0x283   :  { %v1085_v50 = vsub.f32 0.0, %v1077_v43  ;;  %v1043_v48 = vadd.f32 -0.28449672, %v1039_v44  ;;  %v1050_v6 = vadd.f32 0.2548296, %v1046_v47  ;;  %v2713_v44 = vld [vmem:[%s3463_s3 + $0xe0] sm:$0xff]  }
 0x284   :  { %v1096_v49 = vmul.f32 %v1092_v46, %v996_v45  ;;  %v2715_v47 = vld [vmem:[%s3463_s3 + $0xd8] sm:$0xff]  }
 0x285   :  { %v1089_v51 = vsel %vm1081_vm6, %v1077_v43, %v1085_v50  ;;  %v1047_v56 = vmul.f32 %v2769_v11, %v1043_v48  ;;  %v1054_v57 = vmul.f32 %v2767_v5, %v1050_v6  ;;  %v2712_v43 = vld [vmem:[%s3463_s3 + $0xa0] sm:$0xff]   ;;  %v2718_v6 = vld [vmem:[%s3463_s3 + $0x88] sm:$0xff]  }
 0x286   :  { %v1104_v53 = vmul.f32 %v1103_v52, %v1096_v49  ;;  %v1093_v55 = vadd.f32 1.0, %v1089_v51  ;;  %v2716_v49 = vld [vmem:[%s3463_s3 + $0x90] sm:$0xff]   ;;  %v2719_v51 = vld [vmem:[%s3463_s3 + $0xc8] sm:$0xff]  }
 0x287   :  { %v1051_v58 = vadd.f32 0.2548296, %v1047_v56  ;;  %v1074_v1 = vmul.f32 %v2775_v2, %v1054_v57  ;;  %v2720_v56 = vld [vmem:[%s3463_s3 + $0x80] sm:$0xff]   ;;  %v2722_v57 = vld [vmem:[%s3463_s3 + $0x138] sm:$0xff]  }
 0x288   :  { %v3293_v62 = vadd.f32 %v1111_v59, %v1104_v53  ;;  %v1097_v63 = vmul.f32 %v1093_v55, %v997_v54  ;;  %v2721_v53 = vld [vmem:[%s3463_s3 + $0xc0] sm:$0xff]  }
 0x289   :  { %v1055_v7 = vmul.f32 %v2769_v11, %v1051_v58  ;;  %v1078_v12 = vsub.f32 1.0, %v1074_v1 }
 0x28a   :  { %1116 = vst [vmem:[#allocation2 + $0x8] sm:$0xff] %v3293_v62  ;;  %v1105_v31 = vmul.f32 %v1103_v52, %v1097_v63  ;;  %v2723_v63 = vld [vmem:[%s3463_s3 + $0x130] sm:$0xff]  }
 0x28b   :  { %v1075_v61 = vmul.f32 %v2777_v60, %v1055_v7  ;;  %v1086_v4 = vsub.f32 0.0, %v1078_v12  ;;  %v2724_v7 = vld [vmem:[%s3463_s3 + $0x128] sm:$0xff]  }
 0x28c   :  { %v3296_v8 = vadd.f32 %v1111_v59, %v1105_v31 }
 0x28d   :  { %v1079_v3 = vsub.f32 1.0, %v1075_v61  ;;  %v1090_v5 = vsel %vm1082_vm7, %v1078_v12, %v1086_v4  ;;  %v2725_v12 = vld [vmem:[%s3463_s3 + $0x120] sm:$0xff]  }
 0x28e   :  { %1117 = vst [vmem:[#allocation2 + $0x10] sm:$0xff] %v3296_v8  ;;  %v1094_v10 = vadd.f32 1.0, %v1090_v5  ;;  %v1379_v2 = vpack.c.bf16 %v3296_v8, %v3293_v62  ;;  %v2726_v8 = vld [vmem:[%s3463_s3 + $0x118] sm:$0xff]   ;;  %v2727_v5 = vld [vmem:[%s3463_s3 + $0x110] sm:$0xff]  }
 0x28f   :  { %v1087_v14 = vsub.f32 0.0, %v1079_v3 }
 0x290   :  { %v1098_v11 = vmul.f32 %v1094_v10, %v998_v9  ;;  %v2728_v9 = vld [vmem:[%s3463_s3 + $0x108] sm:$0xff]   ;;  %v2729_v10 = vld [vmem:[%s3463_s3 + $0x100] sm:$0xff]  }
 0x291   :  { %v1091_v0 = vsel %vm1083_vm8, %v1079_v3, %v1087_v14  ;;  %v1144_v13 = vld [vmem:[#allocation2 + $0x7] sm:$0xff] }
 0x292   :  { %v1095_v19 = vadd.f32 1.0, %v1091_v0  ;;  %v1106_v34 = vmul.f32 %v1103_v52, %v1098_v11  ;;  %v1120_v39 = vld [vmem:[#allocation2 + $0x6] sm:$0xff] }
 0x294   :  { %v1099_v20 = vmul.f32 %v1095_v19, %v999_v18  ;;  %v3309_v36 = vadd.f32 %v1111_v59, %v1106_v34 }
 0x295   :  { %v1145_v22 = vld [vmem:[#allocation2 + $0xf] sm:$0xff]  ;;  %v1146_v32 = vld [vmem:[#allocation2 + $0x17] sm:$0xff] }
 0x296   :  { %v1121_v21 = vld [vmem:[#allocation2 + $0xe] sm:$0xff]  ;;  %v1107_v24 = vmul.f32 %v1103_v52, %v1099_v20  ;;  %v1149_v16 = vpack.c.bf16 %v1145_v22, %v1144_v13  ;;  %1118 = vst [vmem:[#allocation2 + $0x20] sm:$0xff] %v3309_v36  ;;  %v1122_v38 = vld [vmem:[#allocation2 + $0x16] sm:$0xff]  ;;  %v1380_v60 = vpack.c.bf16 %v3309_v36, %v3125_v15  ;;  %v2733_v22 = vld [vmem:[#allocation6 + $0x20] sm:$0xff]  }
 0x297   :  { %v1125_v28 = vpack.c.bf16 %v1121_v21, %v1120_v39  ;;  %v2714_v52 = vld [vmem:[%s3463_s3 + $0x98] sm:$0xff]   ;;  %v1505_v54 = vld [vmem:[#allocation2 + $0x9] sm:$0xff] }
 0x298   :  { %v3312_v17 = vadd.f32 %v1111_v59, %v1107_v24  ;;  %2469 = vmatmul.mubr.bf16.vlgmr.msra.gmra.mxu0 %v1149_v16  ;;  %v2717_v59 = vld [vmem:[%s3463_s3 + $0xd0] sm:$0xff]   ;;  %v2732_v36 = vld [vmem:[#allocation6 + $0x28] sm:$0xff]   ;;  %v2734_v39 = vld [vmem:[#allocation6 + $0x18] sm:$0xff]  }
 0x299   :  { %2497 = vmatmul.mubr.bf16.vlgmr.msra.gmra.mxu1 %v1125_v28  ;;  %2509 = vmatpush3.bf16.msra.mxu0 %v2706_v26  ;;  %v1506_v55 = vld [vmem:[#allocation2 + $0x11] sm:$0xff]  ;;  %v2736_v24 = vld [vmem:[#allocation6 + $0x8] sm:$0xff]   ;;  %v2737_v16 = vld [vmem:[#allocation6] sm:$0xff]  }
 0x29a   :  { %2537 = vmatpush3.bf16.msra.mxu1 %v2707_v25  ;;  %1119 = vst [vmem:[#allocation2 + $0x28] sm:$0xff] %v3312_v17  ;;  %2510 = vmatprep.subr.bf16.mxu0 %v3125_v15  ;;  %v1510_v58 = vpack.c.bf16 %v1506_v55, %v1505_v54  ;;  %v1381_v4 = vpack.c.bf16 %v3312_v17, %v3312_v17  ;;  %v1636_v14 = vld [vmem:[#allocation2 + $0xa] sm:$0xff]  ;;  %v1637_v11 = vld [vmem:[#allocation2 + $0x12] sm:$0xff] }
 0x29b   :  { %2538 = vmatprep.subr.bf16.mxu1 %v3125_v15  ;;  %2472 = vmatprep.mubr.msk.bf16.mxu0 %vm2855_vm0, %v3125_v15  ;;  %v1641_v0 = vpack.c.bf16 %v1637_v11, %v1636_v14  ;;  %v2730_v26 = vld [vmem:[#allocation6 + $0x38] sm:$0xff]   ;;  %v2731_v25 = vld [vmem:[#allocation6 + $0x30] sm:$0xff]  }
 0x29c   :  { %2500 = vmatprep.mubr.msk.bf16.mxu1 %vm2855_vm0, %v3125_v15  ;;  %v2735_v21 = vld [vmem:[#allocation6 + $0x10] sm:$0xff]  }
 0x29d   :  { %2511 = vmatpush3.bf16.msra.mxu0 %v2708_v27  ;;  %v1147_v35 = vld [vmem:[#allocation2 + $0x1f] sm:$0xff] }
 0x29e   :  { %2539 = vmatpush3.bf16.msra.mxu1 %v2709_v42  ;;  %2512 = vmatprep.subr.bf16.mxu0 %v3125_v15  ;;  %v1123_v40 = vld [vmem:[#allocation2 + $0x1e] sm:$0xff]  ;;  %v1150_v37 = vpack.c.bf16 %v1147_v35, %v1146_v32 }
 0x29f   :  { %2540 = vmatprep.subr.bf16.mxu1 %v3125_v15  ;;  %v1126_v41 = vpack.c.bf16 %v1123_v40, %v1122_v38  ;;  %v1507_v1 = vld [vmem:[#allocation2 + $0x19] sm:$0xff] }
 0x2a0   :  { %2473 = vmatmul.mubr.bf16.gmra.mxu0 %v1150_v37  ;;  %v1638_v19 = vld [vmem:[#allocation2 + $0x1a] sm:$0xff] }
 0x2a1   :  { %2501 = vmatmul.mubr.bf16.gmra.mxu1 %v1126_v41  ;;  %2513 = vmatpush3.bf16.msra.mxu0 %v2710_v23  ;;  %v1148_v45 = vld [vmem:[#allocation2 + $0x27] sm:$0xff] }
 0x2a2   :  { %2541 = vmatpush3.bf16.msra.mxu1 %v2711_v33  ;;  %2514 = vmatprep.subr.bf16.mxu0 %v3125_v15  ;;  %v1124_v46 = vld [vmem:[#allocation2 + $0x26] sm:$0xff]  ;;  %v1151_v50 = vpack.c.bf16 %v1148_v45, %v1148_v45 }
 0x2a3   :  { %2542 = vmatprep.subr.bf16.mxu1 %v3125_v15  ;;  %2476 = vmatprep.mubr.msk.bf16.mxu0 %vm2855_vm0, %v3125_v15  ;;  %v1127_v48 = vpack.c.bf16 %v1124_v46, %v1124_v46  ;;  %v1508_v62 = vld [vmem:[#allocation2 + $0x21] sm:$0xff]  ;;  %v1509_v61 = vld [vmem:[#allocation2 + $0x29] sm:$0xff] }
 0x2a4   :  { %2504 = vmatprep.mubr.msk.bf16.mxu1 %vm2855_vm0, %v3125_v15  ;;  %v1511_v31 = vpack.c.bf16 %v1508_v62, %v1507_v1  ;;  %v1512_v3 = vpack.c.bf16 %v1509_v61, %v1509_v61  ;;  %v1639_v18 = vld [vmem:[#allocation2 + $0x22] sm:$0xff]  ;;  %v1640_v20 = vld [vmem:[#allocation2 + $0x2a] sm:$0xff] }
 0x2a5   :  { %2515 = vmatpush3.bf16.msra.mxu0 %v2712_v43  ;;  %v1642_v34 = vpack.c.bf16 %v1639_v18, %v1638_v19  ;;  %v1643_v13 = vpack.c.bf16 %v1640_v20, %v1640_v20 }
 0x2a6   :  { %2543 = vmatpush3.bf16.msra.mxu1 %v2713_v44  ;;  %2516 = vmatprep.subr.bf16.mxu0 %v3125_v15 }
 0x2a7   :  { %2544 = vmatprep.subr.bf16.mxu1 %v3125_v15 }
 0x2a8   :  { %2477 = vmatmul.mubr.bf16.gmra.mxu0 %v1151_v50 }
 0x2a9   :  { %2505 = vmatmul.mubr.bf16.gmra.mxu1 %v1127_v48  ;;  %2517 = vmatpush3.bf16.msra.mxu0 %v2714_v52 }
 0x2aa   :  { %2545 = vmatpush3.bf16.msra.mxu1 %v2715_v47  ;;  %2518 = vmatprep.subr.bf16.mxu0 %v3125_v15 }
 0x2ab   :  { %2546 = vmatprep.subr.bf16.mxu1 %v3125_v15  ;;  %2524 = vmatprep.mubr.msk.bf16.mxu0 %vm2855_vm0, %v3125_v15 }
 0x2ac   :  { %2552 = vmatprep.mubr.msk.bf16.mxu1 %vm2855_vm0, %v3125_v15 }
 0x2ad   :  { %2519 = vmatpush3.bf16.msra.mxu0 %v2716_v49 }
 0x2ae   :  { %2547 = vmatpush3.bf16.msra.mxu1 %v2717_v59  ;;  %2520 = vmatprep.subr.bf16.mxu0 %v3125_v15 }
 0x2af   :  { %2548 = vmatprep.subr.bf16.mxu1 %v3125_v15 }
 0x2b1   :  { %2521 = vmatpush3.bf16.msra.mxu0 %v2718_v6 }
 0x2b2   :  { %2549 = vmatpush3.bf16.msra.mxu1 %v2719_v51  ;;  %2522 = vmatprep.subr.bf16.mxu0 %v3125_v15 }
 0x2b3   :  { %2550 = vmatprep.subr.bf16.mxu1 %v3125_v15 }
 0x2b5   :  { %2523 = vmatpush3.bf16.msra.mxu0 %v2720_v56 }
 0x2b6   :  { %2551 = vmatpush3.bf16.msra.mxu1 %v2721_v53  ;;  %2564 = vmatprep.subr.bf16.mxu0 %v3125_v15 }
 0x2b7   :  { %2592 = vmatprep.subr.bf16.mxu1 %v3125_v15 }
 0x2b8   :  { %2525 = vmatmul.mubr.bf16.vlgmr.msra.gmra.mxu0 %v1379_v2 }
 0x2b9   :  { %2553 = vmatmul.mubr.bf16.vlgmr.msra.gmra.mxu1 %v1510_v58  ;;  %2565 = vmatpush3.bf16.msra.mxu0 %v2722_v57 }
 0x2ba   :  { %2528 = vmatprep.mubr.msk.bf16.mxu0 %vm2855_vm0, %v3125_v15  ;;  %2566 = vmatprep.subr.bf16.mxu0 %v3125_v15 }
 0x2bb   :  { %2556 = vmatprep.mubr.msk.bf16.mxu1 %vm2855_vm0, %v3125_v15  ;;  %2593 = vmatpush3.bf16.msra.mxu1 %v2730_v26 }
 0x2bc   :  { %2594 = vmatprep.subr.bf16.mxu1 %v3125_v15 }
 0x2bd   :  { %2567 = vmatpush3.bf16.msra.mxu0 %v2723_v63 }
 0x2be   :  { %2568 = vmatprep.subr.bf16.mxu0 %v3125_v15 }
 0x2bf   :  { %2595 = vmatpush3.bf16.msra.mxu1 %v2731_v25 }
 0x2c0   :  { %2529 = vmatmul.mubr.bf16.gmra.mxu0 %v1380_v60  ;;  %2596 = vmatprep.subr.bf16.mxu1 %v3125_v15 }
 0x2c1   :  { %2557 = vmatmul.mubr.bf16.gmra.mxu1 %v1511_v31  ;;  %2569 = vmatpush3.bf16.msra.mxu0 %v2724_v7 }
 0x2c2   :  { %2532 = vmatprep.mubr.msk.bf16.mxu0 %vm2855_vm0, %v3125_v15  ;;  %2570 = vmatprep.subr.bf16.mxu0 %v3125_v15 }
 0x2c3   :  { %2560 = vmatprep.mubr.msk.bf16.mxu1 %vm2855_vm0, %v3125_v15  ;;  %2597 = vmatpush3.bf16.msra.mxu1 %v2732_v36 }
 0x2c4   :  { %2598 = vmatprep.subr.bf16.mxu1 %v3125_v15 }
 0x2c5   :  { %2571 = vmatpush3.bf16.msra.mxu0 %v2725_v12 }
 0x2c6   :  { %2572 = vmatprep.subr.bf16.mxu0 %v3125_v15 }
 0x2c7   :  { %2599 = vmatpush3.bf16.msra.mxu1 %v2733_v22 }
 0x2c8   :  { %2533 = vmatmul.mubr.bf16.gmra.mxu0 %v1381_v4  ;;  %2600 = vmatprep.subr.bf16.mxu1 %v3125_v15 }
 0x2c9   :  { %2561 = vmatmul.mubr.bf16.gmra.mxu1 %v1512_v3  ;;  %2573 = vmatpush3.bf16.msra.mxu0 %v2726_v8 }
 0x2ca   :  { %2580 = vmatprep.mubr.msk.bf16.mxu0 %vm2855_vm0, %v3125_v15  ;;  %2574 = vmatprep.subr.bf16.mxu0 %v3125_v15 }
 0x2cb   :  { %2608 = vmatprep.mubr.msk.bf16.mxu1 %vm2855_vm0, %v3125_v15  ;;  %2601 = vmatpush3.bf16.msra.mxu1 %v2734_v39 }
 0x2cc   :  { %2602 = vmatprep.subr.bf16.mxu1 %v3125_v15 }
 0x2cd   :  { %2575 = vmatpush3.bf16.msra.mxu0 %v2727_v5 }
 0x2ce   :  { %2576 = vmatprep.subr.bf16.mxu0 %v3125_v15 }
 0x2cf   :  { %2603 = vmatpush3.bf16.msra.mxu1 %v2735_v21 }
 0x2d0   :  { %2604 = vmatprep.subr.bf16.mxu1 %v3125_v15 }
 0x2d1   :  { %2577 = vmatpush3.bf16.msra.mxu0 %v2728_v9 }
 0x2d2   :  { %2578 = vmatprep.subr.bf16.mxu0 %v3125_v15 }
 0x2d3   :  { %2605 = vmatpush3.bf16.msra.mxu1 %v2736_v24 }
 0x2d4   :  { %2606 = vmatprep.subr.bf16.mxu1 %v3125_v15 }
 0x2d5   :  { %2579 = vmatpush3.bf16.msra.mxu0 %v2729_v10 }
 0x2d6   :  { %2612 = vmatprep.subr.bf16.mxu0 %v3125_v15 }
 0x2d7   :  { %2607 = vmatpush3.bf16.msra.mxu1 %v2737_v16 }
 0x2d8   :  { %2581 = vmatmul.mubr.bf16.vlgmr.msra.gmra.mxu0 %v1641_v0 }
 0x2d9   :  { %2584 = vmatprep.mubr.msk.bf16.mxu0 %vm2855_vm0, %v3125_v15 }
 0x2e0   :  { %2585 = vmatmul.mubr.bf16.gmra.mxu0 %v1642_v34 }
 0x2e1   :  { %2588 = vmatprep.mubr.msk.bf16.mxu0 %vm2855_vm0, %v3125_v15 }
 0x2e8   :  { %2589 = vmatmul.mubr.bf16.gmra.mxu0 %v1643_v13 }
 0x2e9   :  { %2628 = vmatprep.mubr.msk.bf16.mxu0 %vm2855_vm0, %v3125_v15 }
 0x358   :  { %v1250_v28 = vpop.f32.mrf.mxu0 }
 0x359   :  { %v1353_v17 = vpop.f32.mrf.mxu1 }
 0x35a   :  { %v2470_v27 = vpop.f32.mrf.mxu0  ;;  %v1354_v0 = vadd.f32 %v1353_v17, %v1250_v28 }
 0x35b   :  { %v2498_v42 = vpop.f32.mrf.mxu1 }
 0x35c   :  { %v1253_v32 = vpop.f32.mrf.mxu0 }
 0x35d   :  { %v1356_v23 = vpop.f32.mrf.mxu1 }
 0x35e   :  { %v2471_v33 = vpop.f32.mrf.mxu0  ;;  %v1357_v18 = vadd.f32 %v1356_v23, %v1253_v32 }
 0x35f   :  { %v2499_v35 = vpop.f32.mrf.mxu1 }
 0x360   :  { %v1258_v38 = vpop.f32.mrf.mxu0 }
 0x361   :  { %v1361_v40 = vpop.f32.mrf.mxu1 }
 0x362   :  { %v2474_v37 = vpop.f32.mrf.mxu0 }
 0x363   :  { %v2502_v41 = vpop.f32.mrf.mxu1 }
 0x364   :  { %v1260_v43 = vpop.f32.mrf.mxu0 }
 0x365   :  { %v1363_v44 = vpop.f32.mrf.mxu1 }
 0x366   :  { %v2475_v45 = vpop.f32.mrf.mxu0  ;;  %v1364_v27 = vadd.f32 %v1363_v44, %v1260_v43  ;;  %v2783_v44 = vld [vmem:[%s3466_s6] sm:$0xff] }
 0x367   :  { %v2503_v46 = vpop.f32.mrf.mxu1 }
 0x368   :  { %v1265_v52 = vpop.f32.mrf.mxu0 }
 0x369   :  { %v1368_v47 = vpop.f32.mrf.mxu1 }
 0x36a   :  { %v2478_v15 = vpop.f32.mrf.mxu0  ;;  %v1369_v42 = vadd.f32 %v1368_v47, %v1265_v52 }
 0x36b   :  { %v2506_v50 = vpop.f32.mrf.mxu1 }
 0x36c   :  { %v1268_v48 = vpop.f32.mrf.mxu0 }
 0x36d   :  { %v1371_v49 = vpop.f32.mrf.mxu1 }
 0x36e   :  { %v2479_v59 = vpop.f32.mrf.mxu0 }
 0x36f   :  { %v2507_v6 = vpop.f32.mrf.mxu1 }
 0x378   :  { %v1480_v51 = vpop.f32.mrf.mxu0 }
 0x379   :  { %v1611_v56 = vpop.f32.mrf.mxu1  ;;  %v1501_v19 = vadd.f32 %v1480_v51, %v1354_v0 }
 0x37a   :  { %v2526_v53 = vpop.f32.mrf.mxu0 }
 0x37b   :  { %v2554_v54 = vpop.f32.mrf.mxu1  ;;  %v1632_v26 = vadd.f32 %v1611_v56, %v1501_v19 }
 0x37c   :  { %v1483_v55 = vpop.f32.mrf.mxu0 }
 0x37d   :  { %v1614_v57 = vpop.f32.mrf.mxu1  ;;  %v1502_v34 = vadd.f32 %v1483_v55, %v1357_v18 }
 0x37e   :  { %v2527_v2 = vpop.f32.mrf.mxu0 }
 0x37f   :  { %v2555_v58 = vpop.f32.mrf.mxu1  ;;  %v1633_v25 = vadd.f32 %v1614_v57, %v1502_v34 }
 0x380   :  { %v1488_v63 = vpop.f32.mrf.mxu0 }
 0x381   :  { %v1619_v62 = vpop.f32.mrf.mxu1 }
 0x382   :  { %v2530_v1 = vpop.f32.mrf.mxu0  ;;  %v2738_v62 = vld [vmem:[#allocation8 + $0x38] sm:$0xff]  }
 0x383   :  { %v2558_v7 = vpop.f32.mrf.mxu1  ;;  %2613 = vmatpush3.bf16.msra.mxu0 %v2738_v62  ;;  %v2784_v1 = vld [vmem:[#allocation2] sm:$0xff] }
 0x384   :  { %v1490_v60 = vpop.f32.mrf.mxu0  ;;  %2614 = vmatprep.subr.bf16.mxu0 %v2784_v1  ;;  %v2739_v7 = vld [vmem:[#allocation8 + $0x30] sm:$0xff]  }
 0x385   :  { %v1621_v31 = vpop.f32.mrf.mxu1  ;;  %v1503_v38 = vadd.f32 %v1490_v60, %v1364_v27  ;;  %v2740_v60 = vld [vmem:[#allocation8 + $0x28] sm:$0xff]  }
 0x386   :  { %v2531_v12 = vpop.f32.mrf.mxu0 }
 0x387   :  { %v2559_v61 = vpop.f32.mrf.mxu1  ;;  %v1634_v37 = vadd.f32 %v1621_v31, %v1503_v38  ;;  %2615 = vmatpush3.bf16.msra.mxu0 %v2739_v7  ;;  %v2741_v31 = vld [vmem:[#allocation8 + $0x20] sm:$0xff]   ;;  %v2742_v12 = vld [vmem:[#allocation8 + $0x18] sm:$0xff]  }
 0x388   :  { %v1495_v8 = vpop.f32.mrf.mxu0  ;;  %2616 = vmatprep.subr.bf16.mxu0 %v2784_v1  ;;  %v2743_v61 = vld [vmem:[#allocation8 + $0x10] sm:$0xff]  }
 0x389   :  { %v1626_v4 = vpop.f32.mrf.mxu1  ;;  %v1504_v40 = vadd.f32 %v1495_v8, %v1369_v42  ;;  %v2744_v8 = vld [vmem:[#allocation8 + $0x8] sm:$0xff]  }
 0x38a   :  { %v2534_v3 = vpop.f32.mrf.mxu0 }
 0x38b   :  { %v2562_v5 = vpop.f32.mrf.mxu1  ;;  %v1635_v41 = vadd.f32 %v1626_v4, %v1504_v40  ;;  %2617 = vmatpush3.bf16.msra.mxu0 %v2740_v60  ;;  %v2745_v4 = vld [vmem:[#allocation8] sm:$0xff]   ;;  %v1806_v3 = vsub.s32 7, %v3002_v29 }
 0x38c   :  { %v1498_v9 = vpop.f32.mrf.mxu0  ;;  %2618 = vmatprep.subr.bf16.mxu0 %v2784_v1 }
 0x38d   :  { %v1629_v10 = vpop.f32.mrf.mxu1  ;;  %v1807_v5 = vrot.slane %v2783_v44, %v1806_v3 }
 0x38e   :  { %v2535_v14 = vpop.f32.mrf.mxu0 }
 0x38f   :  { %v2563_v11 = vpop.f32.mrf.mxu1  ;;  %2619 = vmatpush3.bf16.msra.mxu0 %v2741_v31 }
 0x390   :  { %2620 = vmatprep.subr.bf16.mxu0 %v2784_v1 }
 0x393   :  { %2621 = vmatpush3.bf16.msra.mxu0 %v2742_v12 }
 0x394   :  { %2622 = vmatprep.subr.bf16.mxu0 %v2784_v1 }
 0x397   :  { %2623 = vmatpush3.bf16.msra.mxu0 %v2743_v61 }
 0x398   :  { %v1742_v20 = vpop.f32.mrf.mxu0  ;;  %2624 = vmatprep.subr.bf16.mxu0 %v2784_v1 }
 0x399   :  { %v1763_v22 = vadd.f32 %v1742_v20, %v1632_v26 }
 0x39a   :  { %v2582_v13 = vpop.f32.mrf.mxu0 }
 0x39b   :  { %2625 = vmatpush3.bf16.msra.mxu0 %v2744_v8 }
 0x39c   :  { %v1745_v36 = vpop.f32.mrf.mxu0  ;;  %2626 = vmatprep.subr.bf16.mxu0 %v2784_v1 }
 0x39d   :  { %v1764_v39 = vadd.f32 %v1745_v36, %v1633_v25 }
 0x39e   :  { %v2583_v21 = vpop.f32.mrf.mxu0 }
 0x39f   :  { %v1768_v24 = vmax.f32 %v1763_v22, %v1764_v39  ;;  %2627 = vmatpush3.bf16.msra.mxu0 %v2745_v4 }
 0x3a0   :  { %v1750_v16 = vpop.f32.mrf.mxu0 }
 0x3a1   :  { %v1769_v33 = vrot.slane %v1768_v24, 4 }
 0x3a2   :  { %v2586_v35 = vpop.f32.mrf.mxu0 }
 0x3a3   :  { %v1770_v28 = vmax.f32 %v1768_v24, %v1769_v33 }
 0x3a4   :  { %v1752_v17 = vpop.f32.mrf.mxu0 }
 0x3a5   :  { %v1771_v32 = vrot.slane %v1770_v28, 2  ;;  %v1765_v50 = vadd.f32 %v1752_v17, %v1634_v37 }
 0x3a6   :  { %v2587_v23 = vpop.f32.mrf.mxu0 }
 0x3a7   :  { %v1772_v45 = vmax.f32 %v1770_v28, %v1771_v32 }
 0x3a8   :  { %v1757_v46 = vpop.f32.mrf.mxu0 }
 0x3a9   :  { %v1773_v15 = vrot.slane %v1772_v45, 1  ;;  %v1766_v48 = vadd.f32 %v1757_v46, %v1635_v41  ;;  %v72_v46 = vld [vmem:[%s3466_s6 + $0x8] sm:$0xff] }
 0x3aa   :  { %v2590_v49 = vpop.f32.mrf.mxu0 }
 0x3ab   :  { %v1774_v59 = vmax.f32 %v1772_v45, %v1773_v15  ;;  %v1777_v6 = vmax.f32 %v1765_v50, %v1766_v48  ;;  %v1942_v15 = vrot.slane %v72_v46, %v96_v30 }
 0x3ac   :  { %v1760_v43 = vpop.f32.mrf.mxu0 }
 0x3ad   :  { %v1775_v52 = vadd.f32 %v2783_v44, %v1774_v59  ;;  %v1778_v47 = vrot.slane %v1777_v6, 4 }
 0x3ae   :  { %v2591_v51 = vpop.f32.mrf.mxu0 }
 0x3af   :  { %1776 = vst [vmem:[#allocation3 - $0x6] sm:$0x40] %v1775_v52  ;;  %v1779_v56 = vmax.f32 %v1777_v6, %v1778_v47 }
 0x3b1   :  { %v1780_v53 = vrot.slane %v1779_v56, 2 }
 0x3b3   :  { %v1781_v54 = vmax.f32 %v1779_v56, %v1780_v53 }
 0x3b5   :  { %v1782_v55 = vrot.slane %v1781_v54, 1 }
 0x3b7   :  { %v1783_v57 = vmax.f32 %v1781_v54, %v1782_v55 }
 0x3b9   :  { %v1784_v2 = vadd.f32 %v2783_v44, %v1783_v57 }
 0x3bb   :  { %1785 = vst [vmem:[#allocation3 - $0x5] sm:$0x40] %v1784_v2 }
 0x3c2   :  { %v1786_v58 = vld [vmem:[#allocation3] sm:$0xff] }
 0x3c3   :  { %v1787_v63 = vpack.c.bf16 %v1786_v58, %v1786_v58 }
 0x3c5   :  { %2609 = vmatmul.mubr.bf16.vlgmr.msra.gmra.mxu1 %v1787_v63 }
 0x485   :  { %v1890_v9 = vpop.f32.mrf.mxu1 }
 0x486   :  { %v1891_v10 = vadd.f32 %v1890_v9, %v1807_v5 }
 0x487   :  { %v2610_v14 = vpop.f32.mrf.mxu1 }
 0x488   :  { %v1897_v11 = vmul.f32 0.70710677, %v1891_v10  ;;  %v1896_v23 = vmul.f32 0.5, %v1891_v10 }
 0x489   :  { %v1893_v0 = vpop.f32.mrf.mxu1 }
 0x48a   :  { %v1898_v18 = vand.u32 2147483647, %v1897_v11  ;;  %vm1917_vm9 = vcmp.ge.f32.partialorder %v1897_v11, 0.0 }
 0x48b   :  { %v2611_v19 = vpop.f32.mrf.mxu1 }
 0x48c   :  { %v1899_v34 = vmul.f32 0.3275911, %v1898_v18  ;;  %v1911_v13 = vsub.f32 0.0, %v1898_v18 }
 0x48e   :  { %v1900_v20 = vadd.f32 1.0, %v1899_v34  ;;  %v1912_v26 = vmul.f32 %v1911_v13, %v1898_v18 }
 0x490   :  { %2778 = vrcp.f32 %v1900_v20  ;;  %v1913_v22 = vmul.f32 1.442695, %v1912_v26 }
 0x492   :  { %2780 = vpow2.f32 %v1913_v22 }
 0x49d   :  { %v2779_v25 = vpop.eup %2778 }
 0x49e   :  { %v1902_v36 = vmul.f32 1.0614054, %v2779_v25 }
 0x49f   :  { %v2781_v38 = vpop.eup %2780 }
 0x4a0   :  { %v1903_v39 = vadd.f32 -1.4531521, %v1902_v36 }
 0x4a2   :  { %v1904_v21 = vmul.f32 %v2779_v25, %v1903_v39 }
 0x4a4   :  { %v1905_v24 = vadd.f32 1.4214138, %v1904_v21 }
 0x4a6   :  { %v1906_v16 = vmul.f32 %v2779_v25, %v1905_v24 }
 0x4a8   :  { %v1907_v27 = vadd.f32 -0.28449672, %v1906_v16 }
 0x4aa   :  { %v1908_v42 = vmul.f32 %v2779_v25, %v1907_v27 }
 0x4ac   :  { %v1909_v33 = vadd.f32 0.2548296, %v1908_v42 }
 0x4ae   :  { %v1910_v35 = vmul.f32 %v2779_v25, %v1909_v33 }
 0x4b0   :  { %v1915_v40 = vmul.f32 %v2781_v38, %v1910_v35 }
 0x4b2   :  { %v1916_v28 = vsub.f32 1.0, %v1915_v40 }
 0x4b4   :  { %v1918_v17 = vsub.f32 0.0, %v1916_v28 }
 0x4b6   :  { %v1919_v32 = vsel %vm1917_vm9, %v1916_v28, %v1918_v17 }
 0x4b7   :  { %v1920_v37 = vadd.f32 1.0, %v1919_v32 }
 0x4b9   :  { %v1921_v41 = vmul.f32 %v1920_v37, %v1896_v23 }
 0x4bb   :  { %v1922_v45 = vpack.c.bf16 %v1921_v41, %v1921_v41 }
 0x4bd   :  { %2629 = vmatmul.mubr.bf16.vlgmr.msra.gmra.mxu0 %v1922_v45 }
 0x57d   :  { %v2025_v50 = vpop.f32.mrf.mxu0 }
 0x57e   :  { %v2026_v48 = vadd.f32 %v2025_v50, %v1942_v15 }
 0x57f   :  { %v2630_v49 = vpop.f32.mrf.mxu0 }
 0x580   :  { %2031 = vst [vmem:[%s3467_s7] sm:$0xff] %v2026_v48 }
 0x581   :  { %v2028_v59 = vpop.f32.mrf.mxu0 }
 0x583   :  { %v2631_v6 = vpop.f32.mrf.mxu0 }
 0x584   :  { %2036 = vsyncpa [#allocation5], 1 }
 0x585   :  { %2037 = vsyncpa [#allocation7], 1 }

</bundles_post_ra>
